<compile_context>
chip_gen: v7x
topology: tpu7x:2x2x1
jax: 0.10.0
libtpu: 0.0.40
codegen_flags: <defaults>
</compile_context>

<pallas_src>
import functools

import jax
import jax.numpy as jnp
from jax.experimental import pallas as pl
from jax.experimental.pallas import tpu as pltpu

_LANE = 128


def _round_up(v, m):
    return ((v + m - 1) // m) * m


def _add_paddings(c_in, K, stride, dilation, padding):
    # Mirrors Cov1dBlock.__init__ exactly (it computes the 'same' padding from
    # input_size, i.e. the channel count).
    eff = (K - 1) * dilation + 1
    if padding == "same":
        input_rows = c_in
        out_rows = (input_rows + stride - 1) // stride
        return max(0, (out_rows - 1) * stride + eff - input_rows)
    elif padding == "half":
        return K
    return 0


# ---------------------------------------------------------------------------
# Kernel A: conv (K accumulating MXU matmuls) + per-tile BN partial stats.
# ---------------------------------------------------------------------------
def _conv_stats_kernel(x_ref, halo_ref, w_ref, conv_ref, sum_ref, sq_ref, *,
                       K, dilation, stride, tl_out, l_out):
    # x_ref   : (1, Cp_in, TL_step)   NCL tile (channels on sublanes, L on lanes)
    # halo_ref: (1, 1, Cp_in, H)      first H columns of the *next* L tile
    # w_ref   : (K, Cp_out, Cp_in)    w_ref[k, o, c] == torch weight[o, c, k]
    # conv_ref: (1, Cp_out, TL_out)   conv output tile (pre-BN), stored in x.dtype
    # sum_ref : (1, 1, Cp_out, 1)     per-tile per-channel sum (f32)
    # sq_ref  : (1, 1, Cp_out, 1)     per-tile per-channel sum of squares (f32)
    x = jnp.concatenate([x_ref[0], halo_ref[0, 0]], axis=1)  # (Cp_in, TLs + H)
    cp_in = x.shape[0]
    span = (tl_out - 1) * stride + 1

    acc = None
    for k in range(K):
        start = k * dilation
        xk = jax.lax.slice(x, (0, start), (cp_in, start + span), (1, stride))
        part = jnp.dot(w_ref[k], xk, preferred_element_type=jnp.float32)
        acc = part if acc is None else acc + part          # (Cp_out, tl_out)
    # NOTE: no Conv1d bias — it cancels exactly under training-mode BN.

    # Zero the lanes past the true L_out (last tile) so they neither pollute
    # the batch statistics nor leak garbage into the stored intermediate.
    valid = l_out - pl.program_id(1) * tl_out
    col = jax.lax.broadcasted_iota(jnp.int32, acc.shape, 1)
    acc = jnp.where(col < valid, acc, 0.0)

    conv_ref[0] = acc.astype(conv_ref.dtype)
    sum_ref[0, 0] = jnp.sum(acc, axis=1, keepdims=True)
    sq_ref[0, 0] = jnp.sum(acc * acc, axis=1, keepdims=True)


# ---------------------------------------------------------------------------
# Kernel B: fused BatchNorm scale/shift + clamp, writes NCL output directly.
# ---------------------------------------------------------------------------
def _bn_clamp_kernel(conv_ref, scale_ref, shift_ref, o_ref, *,
                     clamp_min, clamp_max):
    # conv_ref : (1, Cp_out, TLB_in)
    # scale_ref: (Cp_out, 1)   gamma * rsqrt(var + eps)
    # shift_ref: (Cp_out, 1)   beta - mean * scale
    # o_ref    : (1, C_out, TLB_out) with C_out <= Cp_out, TLB_out <= TLB_in
    y = conv_ref[0].astype(jnp.float32) * scale_ref[...] + shift_ref[...]
    y = jnp.clip(y, clamp_min, clamp_max)
    c_out = o_ref.shape[1]
    tl = o_ref.shape[2]
    o_ref[0] = y[:c_out, :tl].astype(o_ref.dtype)


def cov1d_block_forward(x, w, b, gamma, beta, *, stride=1, dilation=1,
                        padding="same", eps=1e-3, max_l_tile=512):
    """Forward pass of Cov1dBlock (bn=True, activationUse=True, no dropout).

    x: (N, C_in, L); w: (C_out, C_in, K); b/gamma/beta: (C_out,).
    `b` is accepted for API parity but unused: with training-mode BatchNorm a
    per-channel bias added before BN has zero effect on the output.
    Compute / intermediate dtype follows x.dtype (feed bf16 activations to
    halve HBM traffic; f32 inputs give exact f32 results).
    """
    del b  # cancels under batch-statistics BatchNorm
    N, C_in, L = x.shape
    C_out, C_in_w, K = w.shape
    assert C_in_w == C_in
    out_dtype = x.dtype
    cdt = x.dtype                             # compute / intermediate dtype
    w = w.astype(cdt)

    eff = (K - 1) * dilation + 1
    add_pad = _add_paddings(C_in, K, stride, dilation, padding)
    if add_pad > 0:
        p = add_pad // 2                      # nn.ReflectionPad1d(addPaddings // 2)
        x = jnp.pad(x, ((0, 0), (0, 0), (p, p)), mode="reflect")
    L_pad = x.shape[-1]
    L_out = (L_pad - eff) // stride + 1
    assert L_out >= 1

    # ---- channel / length padding for lane-dense, MXU-friendly tiles ------
    Cp_in = _round_up(C_in, _LANE)
    Cp_out = _round_up(C_out, _LANE)

    # Kernel-A L tiling (output frames per grid step) with an input halo.
    TLo = min(max_l_tile, _round_up(L_out, _LANE))        # multiple of 128
    n_l = pl.cdiv(L_out, TLo)
    TLs = TLo * stride                                    # input cols per step
    H = max(eff - stride, 1)                              # halo columns
    if H > TLs:
        raise NotImplementedError("receptive field larger than one L tile")
    Lc = n_l * TLo                                        # padded conv length
    Lx = n_l * TLs + H                                    # padded input length

    x_p = x[:, :, :Lx] if L_pad > Lx else x               # tail cols are unused
    x_p = jnp.pad(x_p, ((0, 0), (0, Cp_in - C_in), (0, Lx - x_p.shape[-1])))

    # halo[n, l] = x_p[n, :, (l+1)*TLs : (l+1)*TLs + H]   (small array)
    tail = x_p[:, :, TLs:]
    tail = jnp.pad(tail, ((0, 0), (0, 0), (0, n_l * TLs - tail.shape[-1])))
    halo = tail.reshape(N, Cp_in, n_l, TLs)[..., :H]
    halo = jnp.transpose(halo, (0, 2, 1, 3))              # (N, n_l, Cp_in, H)

    # weights: (K, Cp_out, Cp_in) so w_ref[k] @ x_tap needs no in-kernel transpose.
    w_p = jnp.pad(w, ((0, Cp_out - C_out), (0, Cp_in - C_in), (0, 0)))
    w_p = jnp.transpose(w_p, (2, 0, 1))

    # VMEM budget for kernel A (double-buffered blocks + in-kernel temps),
    # clamped to [32, 64] MiB so it is safe on v5e/v6e/v7x.
    itm = jnp.dtype(cdt).itemsize
    block_bytes = ((Cp_in * TLs + Cp_in * H + K * Cp_out * Cp_in) * itm
                   + Cp_out * TLo * itm + 2 * Cp_out * 4)
    scratch_bytes = (Cp_in * (TLs + H) * itm + 2 * Cp_in * TLo * itm
                     + 2 * Cp_out * TLo * 4)
    vmem_a = int(min(64 * 2 ** 20,
                     max(32 * 2 ** 20,
                         2 * block_bytes + scratch_bytes + (2 << 20))))

    conv_kernel = functools.partial(
        _conv_stats_kernel, K=K, dilation=dilation, stride=stride,
        tl_out=TLo, l_out=L_out)

    conv_out, psum, psq = pl.pallas_call(
        conv_kernel,
        out_shape=(
            jax.ShapeDtypeStruct((N, Cp_out, Lc), cdt),
            jax.ShapeDtypeStruct((N, n_l, Cp_out, 1), jnp.float32),
            jax.ShapeDtypeStruct((N, n_l, Cp_out, 1), jnp.float32),
        ),
        grid=(N, n_l),
        in_specs=[
            pl.BlockSpec((1, Cp_in, TLs), lambda n, l: (n, 0, l)),
            pl.BlockSpec((1, 1, Cp_in, H), lambda n, l: (n, l, 0, 0)),
            # TODO(synk): pipeline_mode=pl.Buffered(1) on this constant-index
            # weight block would drop its second VMEM buffer.
            pl.BlockSpec((K, Cp_out, Cp_in), lambda n, l: (0, 0, 0)),
        ],
        out_specs=(
            pl.BlockSpec((1, Cp_out, TLo), lambda n, l: (n, 0, l)),
            pl.BlockSpec((1, 1, Cp_out, 1), lambda n, l: (n, l, 0, 0)),
            pl.BlockSpec((1, 1, Cp_out, 1), lambda n, l: (n, l, 0, 0)),
        ),
        compiler_params=pltpu.CompilerParams(
            dimension_semantics=("parallel", "parallel"),
            vmem_limit_bytes=vmem_a),
    )(x_p, halo, w_p)

    # ---- fold BatchNorm into per-channel scale/shift (O(C) math) ----------
    cnt = jnp.float32(N * L_out)
    ssum = jnp.sum(psum[..., 0], axis=(0, 1))             # (Cp_out,)
    ssq = jnp.sum(psq[..., 0], axis=(0, 1))
    mean = ssum / cnt
    var = jnp.maximum(ssq / cnt - mean * mean, 0.0)
    gamma_p = jnp.pad(gamma.astype(jnp.float32), (0, Cp_out - C_out))
    beta_p = jnp.pad(beta.astype(jnp.float32), (0, Cp_out - C_out))
    scale = gamma_p * jax.lax.rsqrt(var + eps)
    shift = beta_p - mean * scale
    scale2 = scale.reshape(Cp_out, 1)                     # sublane-per-channel
    shift2 = shift.reshape(Cp_out, 1)

    # ---- kernel B: normalize + clamp, NCL output written directly ---------
    if L_out < _LANE:
        TLb_out = L_out                                   # full-dim block
    else:
        TLb_out = _LANE * min(L_out // _LANE, max(1, max_l_tile // _LANE))
    TLb_in = _round_up(TLb_out, _LANE)
    n_lb = pl.cdiv(L_out, TLb_out)

    bn_kernel = functools.partial(_bn_clamp_kernel, clamp_min=0.0,
                                  clamp_max=20.0)

    out = pl.pallas_call(
        bn_kernel,
        out_shape=jax.ShapeDtypeStruct((N, C_out, L_out), out_dtype),
        grid=(N, n_lb),
        in_specs=[
            pl.BlockSpec((1, Cp_out, TLb_in), lambda n, l: (n, 0, l)),
            pl.BlockSpec((Cp_out, 1), lambda n, l: (0, 0)),
            pl.BlockSpec((Cp_out, 1), lambda n, l: (0, 0)),
        ],
        out_specs=pl.BlockSpec((1, C_out, TLb_out), lambda n, l: (n, 0, l)),
        compiler_params=pltpu.CompilerParams(
            dimension_semantics=("parallel", "parallel")),
    )(conv_out, scale2, shift2)

    return out


# ---------------------------------------------------------------------------
# Pure-JAX reference (includes the Conv1d bias to demonstrate it cancels).
# ---------------------------------------------------------------------------
def _reference_forward(x, w, b, gamma, beta, *, stride, dilation,
                       padding="same", eps=1e-3):
    N, C_in, L = x.shape
    C_out, _, K = w.shape
    add_pad = _add_paddings(C_in, K, stride, dilation, padding)
    if add_pad > 0:
        p = add_pad // 2
        x = jnp.pad(x, ((0, 0), (0, 0), (p, p)), mode="reflect")
    out = jax.lax.conv_general_dilated(
        x, w, window_strides=(stride,), padding="VALID",
        rhs_dilation=(dilation,), dimension_numbers=("NCH", "OIH", "NCH"))
    out = out + b[None, :, None]
    mean = out.mean(axis=(0, 2), keepdims=True)
    var = ((out - mean) ** 2).mean(axis=(0, 2), keepdims=True)
    y = (out - mean) / jnp.sqrt(var + eps)
    y = y * gamma[None, :, None] + beta[None, :, None]
    return jnp.clip(y, 0.0, 20.0)


if __name__ == "__main__":
    # Module config: Cov1dBlock(input_size=4, output_size=8, kernal_size=(5,),
    #                           stride=1, dilation=1, padding='same', bn=True)
    N, C_in, C_out, K, L = 2, 4, 8, 5, 16
    stride, dilation = 1, 1

    key = jax.random.PRNGKey(0)
    kx, kw, kb, kg, kbt = jax.random.split(key, 5)
    x = jax.random.normal(kx, (N, C_in, L), dtype=jnp.float32)
    w = jax.random.normal(kw, (C_out, C_in, K), dtype=jnp.float32) * 0.2
    b = jax.random.normal(kb, (C_out,), dtype=jnp.float32) * 0.1
    gamma = 1.0 + 0.1 * jax.random.normal(kg, (C_out,), dtype=jnp.float32)
    beta = 0.1 * jax.random.normal(kbt, (C_out,), dtype=jnp.float32)

    out = cov1d_block_forward(x, w, b, gamma, beta,
                              stride=stride, dilation=dilation)
    out = jax.block_until_ready(out)

    ref = _reference_forward(x, w, b, gamma, beta,
                             stride=stride, dilation=dilation)
    assert out.shape == (N, C_out, L), out.shape
    assert jnp.allclose(out, ref, atol=1e-4, rtol=1e-4), \
        float(jnp.max(jnp.abs(out - ref)))

    # bf16 activation path (halves the HBM traffic of the conv intermediate).
    out_bf = cov1d_block_forward(x.astype(jnp.bfloat16), w, b, gamma, beta,
                                 stride=stride, dilation=dilation)
    out_bf = jax.block_until_ready(out_bf)
    assert out_bf.dtype == jnp.bfloat16
    assert jnp.allclose(out_bf.astype(jnp.float32), ref, atol=0.25), \
        float(jnp.max(jnp.abs(out_bf.astype(jnp.float32) - ref)))

    print("KERNEL_OK")
</pallas_src>

<mosaic_0001>
module attributes {stable_mosaic.version = 11 : i64} {
  func.func @_conv_stats_kernel(%arg0: i32, %arg1: i32, %arg2: memref<1x128x128xf32, #tpu.memory_space<vmem>>, %arg3: memref<1x1x128x4xf32, #tpu.memory_space<vmem>>, %arg4: memref<5x128x128xf32, #tpu.memory_space<vmem>>, %arg5: memref<1x128x128xf32, #tpu.memory_space<vmem>>, %arg6: memref<1x1x128x1xf32, #tpu.memory_space<vmem>>, %arg7: memref<1x1x128x1xf32, #tpu.memory_space<vmem>>) attributes {dimension_semantics = [#tpu.dimension_semantics<parallel>, #tpu.dimension_semantics<parallel>], iteration_bounds = array<i64: 2, 1>, scalar_prefetch = 0 : i64, scratch_operands = 0 : i64, tpu.core_type = #tpu.core_type<tc>, window_params = [{transform_indices = @transform_0, window_bounds = array<i64: 1, 128, 128>}, {transform_indices = @transform_1, window_bounds = array<i64: 1, 1, 128, 4>}, {pipeline_mode = #tpu.pipeline_mode<synchronous>, transform_indices = @transform_2, window_bounds = array<i64: 5, 128, 128>}, {transform_indices = @transform_3, window_bounds = array<i64: 1, 128, 128>}, {transform_indices = @transform_4, window_bounds = array<i64: 1, 1, 128, 1>}, {transform_indices = @transform_5, window_bounds = array<i64: 1, 1, 128, 1>}]} {
    %c0 = arith.constant 0 : index
    %c0_0 = arith.constant 0 : index
    %c0_1 = arith.constant 0 : index
    %0 = vector.load %arg2[%c0, %c0_0, %c0_1] : memref<1x128x128xf32, #tpu.memory_space<vmem>>, vector<1x128x128xf32>
    %1 = vector.shape_cast %0 : vector<1x128x128xf32> to vector<128x128xf32>
    %c0_2 = arith.constant 0 : index
    %c0_3 = arith.constant 0 : index
    %c0_4 = arith.constant 0 : index
    %c0_5 = arith.constant 0 : index
    %2 = vector.load %arg3[%c0_2, %c0_3, %c0_4, %c0_5] : memref<1x1x128x4xf32, #tpu.memory_space<vmem>>, vector<1x1x128x4xf32>
    %3 = vector.shape_cast %2 : vector<1x1x128x4xf32> to vector<128x4xf32>
    %4 = tpu.concatenate %1, %3 in 1 : vector<128x128xf32>, vector<128x4xf32> -> vector<128x132xf32>
    %5 = vector.extract_strided_slice %4 {offsets = [0, 0], sizes = [128, 128], strides = [1, 1]} : vector<128x132xf32> to vector<128x128xf32>
    %c0_6 = arith.constant 0 : index
    %c0_7 = arith.constant 0 : index
    %c0_8 = arith.constant 0 : index
    %6 = vector.load %arg4[%c0_6, %c0_7, %c0_8] : memref<5x128x128xf32, #tpu.memory_space<vmem>>, vector<1x128x128xf32>
    %7 = vector.shape_cast %6 : vector<1x128x128xf32> to vector<128x128xf32>
    %cst = arith.constant dense<0.000000e+00> : vector<128x128xf32>
    %8 = tpu.matmul %7, %5, %cst {dimension_numbers = #tpu.dot_dimension_numbers<[1], [0], [0], [1], [0, 0, 1, 1], [], []>} : vector<128x128xf32>, vector<128x128xf32>, vector<128x128xf32> -> vector<128x128xf32>
    %9 = vector.extract_strided_slice %4 {offsets = [0, 1], sizes = [128, 128], strides = [1, 1]} : vector<128x132xf32> to vector<128x128xf32>
    %c1 = arith.constant 1 : index
    %c0_9 = arith.constant 0 : index
    %c0_10 = arith.constant 0 : index
    %10 = vector.load %arg4[%c1, %c0_9, %c0_10] : memref<5x128x128xf32, #tpu.memory_space<vmem>>, vector<1x128x128xf32>
    %11 = vector.shape_cast %10 : vector<1x128x128xf32> to vector<128x128xf32>
    %cst_11 = arith.constant dense<0.000000e+00> : vector<128x128xf32>
    %12 = tpu.matmul %11, %9, %cst_11 {dimension_numbers = #tpu.dot_dimension_numbers<[1], [0], [0], [1], [0, 0, 1, 1], [], []>} : vector<128x128xf32>, vector<128x128xf32>, vector<128x128xf32> -> vector<128x128xf32>
    %13 = arith.addf %8, %12 : vector<128x128xf32>
    %14 = vector.extract_strided_slice %4 {offsets = [0, 2], sizes = [128, 128], strides = [1, 1]} : vector<128x132xf32> to vector<128x128xf32>
    %c2 = arith.constant 2 : index
    %c0_12 = arith.constant 0 : index
    %c0_13 = arith.constant 0 : index
    %15 = vector.load %arg4[%c2, %c0_12, %c0_13] : memref<5x128x128xf32, #tpu.memory_space<vmem>>, vector<1x128x128xf32>
    %16 = vector.shape_cast %15 : vector<1x128x128xf32> to vector<128x128xf32>
    %cst_14 = arith.constant dense<0.000000e+00> : vector<128x128xf32>
    %17 = tpu.matmul %16, %14, %cst_14 {dimension_numbers = #tpu.dot_dimension_numbers<[1], [0], [0], [1], [0, 0, 1, 1], [], []>} : vector<128x128xf32>, vector<128x128xf32>, vector<128x128xf32> -> vector<128x128xf32>
    %18 = arith.addf %13, %17 : vector<128x128xf32>
    %19 = vector.extract_strided_slice %4 {offsets = [0, 3], sizes = [128, 128], strides = [1, 1]} : vector<128x132xf32> to vector<128x128xf32>
    %c3 = arith.constant 3 : index
    %c0_15 = arith.constant 0 : index
    %c0_16 = arith.constant 0 : index
    %20 = vector.load %arg4[%c3, %c0_15, %c0_16] : memref<5x128x128xf32, #tpu.memory_space<vmem>>, vector<1x128x128xf32>
    %21 = vector.shape_cast %20 : vector<1x128x128xf32> to vector<128x128xf32>
    %cst_17 = arith.constant dense<0.000000e+00> : vector<128x128xf32>
    %22 = tpu.matmul %21, %19, %cst_17 {dimension_numbers = #tpu.dot_dimension_numbers<[1], [0], [0], [1], [0, 0, 1, 1], [], []>} : vector<128x128xf32>, vector<128x128xf32>, vector<128x128xf32> -> vector<128x128xf32>
    %23 = arith.addf %18, %22 : vector<128x128xf32>
    %24 = vector.extract_strided_slice %4 {offsets = [0, 4], sizes = [128, 128], strides = [1, 1]} : vector<128x132xf32> to vector<128x128xf32>
    %c4 = arith.constant 4 : index
    %c0_18 = arith.constant 0 : index
    %c0_19 = arith.constant 0 : index
    %25 = vector.load %arg4[%c4, %c0_18, %c0_19] : memref<5x128x128xf32, #tpu.memory_space<vmem>>, vector<1x128x128xf32>
    %26 = vector.shape_cast %25 : vector<1x128x128xf32> to vector<128x128xf32>
    %cst_20 = arith.constant dense<0.000000e+00> : vector<128x128xf32>
    %27 = tpu.matmul %26, %24, %cst_20 {dimension_numbers = #tpu.dot_dimension_numbers<[1], [0], [0], [1], [0, 0, 1, 1], [], []>} : vector<128x128xf32>, vector<128x128xf32>, vector<128x128xf32> -> vector<128x128xf32>
    %28 = arith.addf %23, %27 : vector<128x128xf32>
    %c128_i32 = arith.constant 128 : i32
    %29 = arith.muli %arg1, %c128_i32 : i32
    %c16_i32 = arith.constant 16 : i32
    %30 = arith.subi %c16_i32, %29 : i32
    %31 = tpu.iota {dimensions = array<i32: 1>} : vector<128x128xi32>
    %32 = vector.broadcast %30 : i32 to vector<128x128xi32>
    %33 = arith.cmpi slt, %31, %32 : vector<128x128xi32>
    %cst_21 = arith.constant 0.000000e+00 : f32
    %34 = vector.broadcast %cst_21 : f32 to vector<128x128xf32>
    %35 = arith.select %33, %28, %34 : vector<128x128xi1>, vector<128x128xf32>
    %c0_22 = arith.constant 0 : index
    %c0_23 = arith.constant 0 : index
    %c0_24 = arith.constant 0 : index
    %36 = vector.load %arg5[%c0_22, %c0_23, %c0_24] : memref<1x128x128xf32, #tpu.memory_space<vmem>>, vector<1x128x128xf32>
    %37 = vector.shape_cast %36 : vector<1x128x128xf32> to vector<128x128xf32>
    %38 = vector.shape_cast %35 : vector<128x128xf32> to vector<1x128x128xf32>
    tpu.vector_store %arg5[%c0_22, %c0_23, %c0_24], %38 {strides = array<i32>} : memref<1x128x128xf32, #tpu.memory_space<vmem>>, vector<1x128x128xf32>,
    %cst_25 = arith.constant dense<0.000000e+00> : vector<128xf32>
    %39 = vector.multi_reduction <add>, %35, %cst_25 [1] : vector<128x128xf32> to vector<128xf32>
    %40 = vector.shape_cast %39 : vector<128xf32> to vector<128x1xf32>
    %c0_26 = arith.constant 0 : index
    %c0_27 = arith.constant 0 : index
    %c0_28 = arith.constant 0 : index
    %c0_29 = arith.constant 0 : index
    %41 = vector.load %arg6[%c0_26, %c0_27, %c0_28, %c0_29] : memref<1x1x128x1xf32, #tpu.memory_space<vmem>>, vector<1x1x128x1xf32>
    %42 = vector.shape_cast %41 : vector<1x1x128x1xf32> to vector<128x1xf32>
    %43 = vector.shape_cast %40 : vector<128x1xf32> to vector<1x1x128x1xf32>
    tpu.vector_store %arg6[%c0_26, %c0_27, %c0_28, %c0_29], %43 {strides = array<i32>} : memref<1x1x128x1xf32, #tpu.memory_space<vmem>>, vector<1x1x128x1xf32>,
    %44 = arith.mulf %35, %35 : vector<128x128xf32>
    %cst_30 = arith.constant dense<0.000000e+00> : vector<128xf32>
    %45 = vector.multi_reduction <add>, %44, %cst_30 [1] : vector<128x128xf32> to vector<128xf32>
    %46 = vector.shape_cast %45 : vector<128xf32> to vector<128x1xf32>
    %c0_31 = arith.constant 0 : index
    %c0_32 = arith.constant 0 : index
    %c0_33 = arith.constant 0 : index
    %c0_34 = arith.constant 0 : index
    %47 = vector.load %arg7[%c0_31, %c0_32, %c0_33, %c0_34] : memref<1x1x128x1xf32, #tpu.memory_space<vmem>>, vector<1x1x128x1xf32>
    %48 = vector.shape_cast %47 : vector<1x1x128x1xf32> to vector<128x1xf32>
    %49 = vector.shape_cast %46 : vector<128x1xf32> to vector<1x1x128x1xf32>
    tpu.vector_store %arg7[%c0_31, %c0_32, %c0_33, %c0_34], %49 {strides = array<i32>} : memref<1x1x128x1xf32, #tpu.memory_space<vmem>>, vector<1x1x128x1xf32>,
    return
  }
  func.func @transform_0(%arg0: i32, %arg1: i32) -> (i32, i32, i32) {
    %c0_i32 = arith.constant 0 : i32
    %c0_i32_0 = arith.constant 0 : i32
    return %arg0, %c0_i32, %arg1 : i32, i32, i32
  }
  func.func @transform_1(%arg0: i32, %arg1: i32) -> (i32, i32, i32, i32) {
    %c0_i32 = arith.constant 0 : i32
    %c0_i32_0 = arith.constant 0 : i32
    %c0_i32_1 = arith.constant 0 : i32
    return %arg0, %arg1, %c0_i32, %c0_i32_0 : i32, i32, i32, i32
  }
  func.func @transform_2(%arg0: i32, %arg1: i32) -> (i32, i32, i32) {
    %c0_i32 = arith.constant 0 : i32
    %c0_i32_0 = arith.constant 0 : i32
    %c0_i32_1 = arith.constant 0 : i32
    %c0_i32_2 = arith.constant 0 : i32
    return %c0_i32, %c0_i32_0, %c0_i32_1 : i32, i32, i32
  }
  func.func @transform_3(%arg0: i32, %arg1: i32) -> (i32, i32, i32) {
    %c0_i32 = arith.constant 0 : i32
    %c0_i32_0 = arith.constant 0 : i32
    return %arg0, %c0_i32, %arg1 : i32, i32, i32
  }
  func.func @transform_4(%arg0: i32, %arg1: i32) -> (i32, i32, i32, i32) {
    %c0_i32 = arith.constant 0 : i32
    %c0_i32_0 = arith.constant 0 : i32
    %c0_i32_1 = arith.constant 0 : i32
    return %arg0, %arg1, %c0_i32, %c0_i32_0 : i32, i32, i32, i32
  }
  func.func @transform_5(%arg0: i32, %arg1: i32) -> (i32, i32, i32, i32) {
    %c0_i32 = arith.constant 0 : i32
    %c0_i32_0 = arith.constant 0 : i32
    %c0_i32_1 = arith.constant 0 : i32
    return %arg0, %arg1, %c0_i32, %c0_i32_0 : i32, i32, i32, i32
  }
}

</mosaic_0001>

<bundles_post_ra>
// kernel: tpu_custom_call.1
= control target key start
LH: loop header
LB: loop body
LE: loop exit
PB: predicated region body
PF: predicated region fallthrough
CT: control target
= control target key end

     0   :  { %11 = vsyncpa [#allocation4], 0  ;;  %s4226_s0 = inlined_call_operand.vmem [shape: f32[2,128,132], index: 0, kind: input, shape index: {}]   ;;  %s4227_s1 = inlined_call_operand.vmem [shape: f32[2,1,128,4], index: 1, kind: input, shape index: {}]   ;;  %s4228_s2 = inlined_call_operand.vmem [shape: f32[5,128,128], index: 2, kind: input, shape index: {}]   ;;  %s4229_s3 = inlined_call_operand.hbm [shape: f32[2,128,128], index: 3, kind: output, shape index: {0}]   ;;  %s4230_s4 = inlined_call_operand.vmem [shape: f32[2,1,128,1], index: 4, kind: output, shape index: {1}]   ;;  %s4231_s5 = inlined_call_operand.vmem [shape: f32[2,1,128,1], index: 5, kind: output, shape index: {2}]  }
   0x1   :  { %13 = vsyncpa [#allocation4 + $0x1], 0  ;;  %s3364_s18 = smov 0   ;;  %s3366_s19 = smov 0  }
   0x2   :  { %s3368_s20 = smov 0   ;;  %s3370_s21 = smov 0  }
   0x3   :  { %s3372_s22 = smov 0   ;;  %s3374_s23 = smov 0  }
   0x4 LB: > { %s2096_s24 = sadd.s32 4294967295, %s3325_s23   ;;  %s2097_s25 = sadd.s32 4294967294, %s3325_s23   ;;  %s3325_s23 = sphi %s3374_s23, %s19_s23   ;;  %s3321_s22 = sphi %s3372_s22, %s4238_s22   ;;  %s3317_s21 = sphi %s3370_s21, %s4237_s21   ;;  %s3313_s20 = sphi %s3368_s20, %s4236_s20   ;;  %s3309_s19 = sphi %s3366_s19, %s4235_s19   ;;  %s3305_s18 = sphi %s3364_s18, %s4234_s18  }
   0x5   : > { %s31_s26 = sadd.s32 1, %s3321_s22  ;;  %s40_s27 = sadd.s32 1, %s3313_s20 }
   0x6   : > { %p33_p0 = scmp.ge.s32.totalorder %s31_s26, 2  ;;  %p47_p1 = scmp.ne.s32.totalorder %s3313_s20, %s3309_s19 }
   0x7   : > { %p48_p2 = scmp.eq.s32.totalorder %s3325_s23, 0  ;;  %p128_p3 = scmp.eq.s32.totalorder %s2096_s24, 1 }
   0x8   : > { %s4240_s26 = smov (%p33_p0, %s31_s26), 0  ;;  %p133_p6 = scmp.ne.s32.totalorder %s3309_s19, %s3305_s18 }
   0x9   : > { %p49_p4 = por %p48_p2, %p47_p1  ;;  %p3403_p5 = por %p128_p3, %p47_p1 }
   0xa   : > { %s35_s29 = ssub.s32 %s3321_s22, %s4240_s26  ;;  %p134_p8 = scmp.eq.s32.totalorder %s2097_s25, 1 }
   0xb   : > { %p38_p7 = scmp.eq.s32.totalorder %s35_s29, 0  ;;  %p2099_p10 = scmp.ge.s32.totalorder %s3325_s23, 2 }
   0xc   : > { %p3414_p9 = por %p134_p8, %p133_p6 }
   0xd   : > { %s3412_s30 = scalar_select %p38_p7, %s3313_s20, %s40_s27  }
   0xe   : > { %209 = sbr.rel (%p2099_p10) target bundleno = 33 (0x21), region = 20 }
  0x15   : > { %212 = sbr.rel (!%p49_p4) target bundleno = 33 (0x21), region = 24  ;;  %s214_s7 = sand.u32 (%p49_p4), 1, %s3313_s20  }
  0x16   : > { %s2181_s8 = sshll.u32 (%p49_p4), %s3321_s22, 8  ;;  %s2100_s9 = sshll.u32 (%p49_p4), %s214_s7, 7 }
  0x17   : > { %s3426_s12 = scalar_lea.vmem (%p49_p4), %s4226_s0, %s2181_s8  ;;  %s216_s13 = scalar_lea.vmem (%p49_p4), [#allocation2], %s2100_s9 }
  0x18   : > { %v278_v0 = vld [vmem:[%s3426_s12] sm:$0xff] (%p49_p4)  ;;  %v280_v1 = vld [vmem:[%s3426_s12 + $0x10] sm:$0xff] (%p49_p4) }
  0x19   : > { %v282_v2 = vld [vmem:[%s3426_s12 + $0x20] sm:$0xff] (%p49_p4)  ;;  %279 = vst [vmem:[%s216_s13] sm:$0xff] (%p49_p4), %v278_v0  ;;  %281 = vst [vmem:[%s216_s13 + $0x8] sm:$0xff] (%p49_p4), %v280_v1  ;;  %v284_v3 = vld [vmem:[%s3426_s12 + $0x30] sm:$0xff] (%p49_p4) }
  0x1a   : > { %283 = vst [vmem:[%s216_s13 + $0x10] sm:$0xff] (%p49_p4), %v282_v2  ;;  %v286_v4 = vld [vmem:[%s3426_s12 + $0x40] sm:$0xff] (%p49_p4)  ;;  %v288_v5 = vld [vmem:[%s3426_s12 + $0x50] sm:$0xff] (%p49_p4)  ;;  %285 = vst [vmem:[%s216_s13 + $0x18] sm:$0xff] (%p49_p4), %v284_v3 }
  0x1b   : > { %287 = vst [vmem:[%s216_s13 + $0x20] sm:$0xff] (%p49_p4), %v286_v4  ;;  %289 = vst [vmem:[%s216_s13 + $0x28] sm:$0xff] (%p49_p4), %v288_v5  ;;  %v290_v6 = vld [vmem:[%s3426_s12 + $0x60] sm:$0xff] (%p49_p4)  ;;  %v292_v7 = vld [vmem:[%s3426_s12 + $0x70] sm:$0xff] (%p49_p4) }
  0x1c   : > { %v294_v8 = vld [vmem:[%s3426_s12 + $0x80] sm:$0xff]  ;;  %291 = vst [vmem:[%s216_s13 + $0x30] sm:$0xff] %v290_v6  ;;  %293 = vst [vmem:[%s216_s13 + $0x38] sm:$0xff] %v292_v7  ;;  %v296_v9 = vld [vmem:[%s3426_s12 + $0x90] sm:$0xff] }
  0x1d   : > { %295 = vst [vmem:[%s216_s13 + $0x40] sm:$0xff] %v294_v8  ;;  %v298_v10 = vld [vmem:[%s3426_s12 + $0xa0] sm:$0xff]  ;;  %v300_v11 = vld [vmem:[%s3426_s12 + $0xb0] sm:$0xff]  ;;  %297 = vst [vmem:[%s216_s13 + $0x48] sm:$0xff] %v296_v9 }
  0x1e   : > { %299 = vst [vmem:[%s216_s13 + $0x50] sm:$0xff] %v298_v10  ;;  %301 = vst [vmem:[%s216_s13 + $0x58] sm:$0xff] %v300_v11  ;;  %v302_v12 = vld [vmem:[%s3426_s12 + $0xc0] sm:$0xff]  ;;  %v304_v13 = vld [vmem:[%s3426_s12 + $0xd0] sm:$0xff] }
  0x1f   : > { %v306_v14 = vld [vmem:[%s3426_s12 + $0xe0] sm:$0xff]  ;;  %303 = vst [vmem:[%s216_s13 + $0x60] sm:$0xff] %v302_v12  ;;  %305 = vst [vmem:[%s216_s13 + $0x68] sm:$0xff] %v304_v13  ;;  %v308_v15 = vld [vmem:[%s3426_s12 + $0xf0] sm:$0xff] }
  0x20   : > { %307 = vst [vmem:[%s216_s13 + $0x70] sm:$0xff] %v306_v14  ;;  %309 = vst [vmem:[%s216_s13 + $0x78] sm:$0xff] %v308_v15 }
  0x21 PF: > { %p2103_p11 = scmp.ge.s32.totalorder %s3325_s23, 1  ;;  %p326_p12 = scmp.lt.s32.totalorder %s3325_s23, 3 }
  0x23   : > { %p327_p13 = pnand %p2103_p11, %p326_p12 }
  0x24   : > { %s333_s14 = sand.u32 (!%p327_p13), 1, %s3309_s19   ;;  %p387_p0 = scmp.lt.s32.totalorder (!%p327_p13), %s3317_s21, 1  ;;  %v2112_v62 = vld [vmem:[%s4228_s2 + $0x80] sm:$0xff] (!%p327_p13)  ;;  %vm979_vm0 = vcmask (!%p327_p13), 1031168   ;;  %vm575_vm1 = vcmask (!%p327_p13), 1039360   ;;  %vm1254_vm2 = vcmask (!%p327_p13), 1022976  }
  0x25   : > { %330 = sbr.rel (%p327_p13) target bundleno = 723 (0x2d3), region = 66  ;;  %s3450_s15 = sshll.u32 (!%p327_p13), %s333_s14, 7  ;;  %2378 = vmatprep.mubr.f32.mxu1 (!%p327_p13), %v2112_v62  ;;  %v2128_v2 = vld [vmem:[%s4228_s2 + $0x100] sm:$0xff] (!%p327_p13)  ;;  %vm1529_vm3 = vcmask (!%p327_p13), 1014784  }
  0x26   : > { %s3456_s24 = scalar_lea.vmem (!%p327_p13), [#allocation2], %s3450_s15  ;;  %s3327_s7 = smov (!%p327_p13), 126   ;;  %2490 = vmatprep.mubr.f32.mxu0 (!%p327_p13), %v2128_v2 }
  0x27   : > { %v3459_v16 = vld [vmem:[%s3456_s24] sm:$0xff] (!%p327_p13)  ;;  %v3469_v18 = vld [vmem:[%s3456_s24 + $0x8] sm:$0xff] (!%p327_p13)  ;;  %s3328_s8 = smov (!%p327_p13), 127   ;;  %v3483_v22 = vld [vmem:[%s3456_s24 + $0x18] sm:$0xff] (!%p327_p13)  ;;  %s3329_s13 = smov (!%p327_p13), 125  }
  0x28   : > { %v3487_v24 = vld [vmem:[%s3456_s24 + $0x10] sm:$0xff] (!%p327_p13)  ;;  %v3501_v28 = vld [vmem:[%s3456_s24 + $0x28] sm:$0xff] (!%p327_p13)  ;;  %v3505_v30 = vld [vmem:[%s3456_s24 + $0x20] sm:$0xff] (!%p327_p13)  ;;  %v3624_v63 = vpack.c.bf16 (!%p327_p13), %v3469_v18, %v3459_v16 }
  0x29   : > { %v3519_v34 = vld [vmem:[%s3456_s24 + $0x38] sm:$0xff] (!%p327_p13)  ;;  %v420_v36 = vld [vmem:[%s3456_s24 + $0x30] sm:$0xff] (!%p327_p13)  ;;  %v3546_v40 = vld [vmem:[%s3456_s24 + $0x48] sm:$0xff] (!%p327_p13)  ;;  %v3641_v3 = vpack.c.bf16 (!%p327_p13), %v3483_v22, %v3487_v24  ;;  %v3649_v4 = vpack.c.bf16 (!%p327_p13), %v3501_v28, %v3505_v30 }
  0x2a   : > { %v3550_v42 = vld [vmem:[%s3456_s24 + $0x40] sm:$0xff] (!%p327_p13)  ;;  %v3568_v46 = vld [vmem:[%s3456_s24 + $0x58] sm:$0xff] (!%p327_p13)  ;;  %v3572_v48 = vld [vmem:[%s3456_s24 + $0x50] sm:$0xff] (!%p327_p13)  ;;  %v3656_v5 = vpack.c.bf16 (!%p327_p13), %v3519_v34, %v420_v36 }
  0x2b   : > { %v3590_v52 = vld [vmem:[%s3456_s24 + $0x68] sm:$0xff] (!%p327_p13)  ;;  %v3594_v54 = vld [vmem:[%s3456_s24 + $0x60] sm:$0xff] (!%p327_p13)  ;;  %v3612_v58 = vld [vmem:[%s3456_s24 + $0x78] sm:$0xff] (!%p327_p13) }
  0x2c   : > { %s388_s16 = scalar_select %p387_p0, %s3317_s21, 1  ;;  %v3616_v60 = vld [vmem:[%s3456_s24 + $0x70] sm:$0xff] }
  0x2d   : > { %s4038_s24 = scalar_lea.vmem [#allocation3], %s3450_s15  ;;  %s2185_s15 = sshll.u32 %s3317_s21, 11 }
  0x2e   : > { %s3453_s17 = sshll.u32 %s388_s16, 7  ;;  %s3330_s16 = smov 124  }
  0x2f   : > { %s3465_s29 = scalar_lea.vmem %s4227_s1, %s3453_s17  ;;  %s1907_s25 = sshll.u32 %s4038_s24, 4  ;;  %s4099_s25 = int_to_ptr.vmem [resolvable:$true] %s1907_s25 }
  0x30   : > { %v430_v17 = vld [vmem:[%s3465_s29] sm:$0xff]  ;;  %v431_v19 = vld [vmem:[%s3465_s29 + $0x8] sm:$0xff]  ;;  %v433_v23 = vld [vmem:[%s3465_s29 + $0x18] sm:$0xff]  ;;  %s3247_s9 = scalar_lea.vmem %s4099_s25, 2048  ;;  %s3331_s21 = smov [#allocation3]  }
  0x31   : > { %v3473_v20 = vpack.i.bf16 %v430_v17, %v3459_v16  ;;  %v3480_v21 = vpack.i.bf16 %v431_v19, %v3469_v18  ;;  %v432_v25 = vld [vmem:[%s3465_s29 + $0x10] sm:$0xff]  ;;  %v3495_v26 = vpack.i.bf16 %v433_v23, %v3483_v22  ;;  %v435_v29 = vld [vmem:[%s3465_s29 + $0x28] sm:$0xff]  ;;  %v434_v31 = vld [vmem:[%s3465_s29 + $0x20] sm:$0xff]  ;;  %p3248_p1 = scmp.ne.s32.totalorder %s4099_s25, %s3247_s9  ;;  %s3251_s10 = sshll.u32 %s3331_s21, 4  ;;  %s3252_s10 = int_to_ptr.vmem [resolvable:$false] %s3251_s10 }
  0x32   : > { %v3498_v27 = vpack.i.bf16 %v432_v25, %v3487_v24  ;;  %v3513_v32 = vpack.i.bf16 %v435_v29, %v3501_v28  ;;  %v3516_v33 = vpack.i.bf16 %v434_v31, %v3505_v30  ;;  %v437_v35 = vld [vmem:[%s3465_s29 + $0x38] sm:$0xff]  ;;  %v436_v37 = vld [vmem:[%s3465_s29 + $0x30] sm:$0xff]  ;;  %v439_v41 = vld [vmem:[%s3465_s29 + $0x48] sm:$0xff]  ;;  %s3253_s11 = scalar_lea.vmem %s3252_s10, 4096  ;;  %p3254_p4 = scmp.lt.s32.totalorder %s4099_s25, %s3252_s10 }
  0x33   : > { %2938 = vrot.lane.b32.xlu1 %v3473_v20, %s3327_s7  ;;  %2928 = vrot.lane.b32.xlu0 %v3473_v20, %s3328_s8  ;;  %v3529_v38 = vpack.i.bf16 %v437_v35, %v3519_v34  ;;  %v3531_v39 = vpack.i.bf16 %v436_v37, %v420_v36  ;;  %v438_v43 = vld [vmem:[%s3465_s29 + $0x40] sm:$0xff]  ;;  %v3558_v44 = vpack.i.bf16 %v439_v41, %v3546_v40  ;;  %v441_v47 = vld [vmem:[%s3465_s29 + $0x58] sm:$0xff]  ;;  %p3249_p2 = pnand %p3248_p1, %p3403_p5  ;;  %p3255_p6 = scmp.lt.s32.totalorder %s3253_s11, %s3247_s9 }
  0x34   : > { %v3561_v45 = vpack.i.bf16 %v438_v43, %v3550_v42  ;;  %v440_v49 = vld [vmem:[%s3465_s29 + $0x50] sm:$0xff]  ;;  %v3580_v50 = vpack.i.bf16 %v441_v47, %v3568_v46  ;;  %v443_v53 = vld [vmem:[%s3465_s29 + $0x68] sm:$0xff]  ;;  %v442_v55 = vld [vmem:[%s3465_s29 + $0x60] sm:$0xff] }
  0x35   : > { %v3583_v51 = vpack.i.bf16 %v440_v49, %v3572_v48  ;;  %v3602_v56 = vpack.i.bf16 %v443_v53, %v3590_v52  ;;  %v3605_v57 = vpack.i.bf16 %v442_v55, %v3594_v54  ;;  %v445_v59 = vld [vmem:[%s3465_s29 + $0x78] sm:$0xff]  ;;  %v444_v61 = vld [vmem:[%s3465_s29 + $0x70] sm:$0xff]  ;;  %p3250_p3 = pneg %p3249_p2  ;;  %p3256_p7 = por %p3255_p6, %p3254_p4 }
  0x36   : > { %v3631_v0 = vpack.i.bf16 %v445_v59, %v3612_v58  ;;  %v3634_v1 = vpack.i.bf16 %v444_v61, %v3616_v60 }
  0x37   : > { %2943 = vrot.lane.b32.xlu1 %v3480_v21, %s3327_s7  ;;  %2933 = vrot.lane.b32.xlu0 %v3480_v21, %s3328_s8  ;;  %p3257_p8 = pnand %p3256_p7, %p3250_p3 }
  0x3b   : > { %2953 = vrot.lane.b32.xlu1 %v3495_v26, %s3328_s8  ;;  %2948 = vrot.lane.b32.xlu0 %v3498_v27, %s3328_s8 }
  0x3f   : > { %2963 = vrot.lane.b32.xlu1 %v3495_v26, %s3327_s7  ;;  %2958 = vrot.lane.b32.xlu0 %v3498_v27, %s3327_s7 }
  0x43   : > { %2973 = vrot.lane.b32.xlu1 %v3513_v32, %s3328_s8  ;;  %2968 = vrot.lane.b32.xlu0 %v3516_v33, %s3328_s8 }
  0x47   : > { %2983 = vrot.lane.b32.xlu1 %v3513_v32, %s3327_s7  ;;  %2978 = vrot.lane.b32.xlu0 %v3516_v33, %s3327_s7 }
  0x4b   : > { %2993 = vrot.lane.b32.xlu1 %v3529_v38, %s3328_s8  ;;  %2988 = vrot.lane.b32.xlu0 %v3531_v39, %s3328_s8 }
  0x4f   : > { %3003 = vrot.lane.b32.xlu1 %v3529_v38, %s3327_s7  ;;  %2998 = vrot.lane.b32.xlu0 %v3531_v39, %s3327_s7 }
  0x53   : > { %3013 = vrot.lane.b32.xlu1 %v3558_v44, %s3328_s8  ;;  %3008 = vrot.lane.b32.xlu0 %v3561_v45, %s3328_s8 }
  0x57   : > { %3023 = vrot.lane.b32.xlu1 %v3558_v44, %s3327_s7  ;;  %3018 = vrot.lane.b32.xlu0 %v3561_v45, %s3327_s7 }
  0x5b   : > { %3033 = vrot.lane.b32.xlu1 %v3580_v50, %s3328_s8  ;;  %3028 = vrot.lane.b32.xlu0 %v3583_v51, %s3328_s8 }
  0x5f   : > { %3043 = vrot.lane.b32.xlu1 %v3580_v50, %s3327_s7  ;;  %3038 = vrot.lane.b32.xlu0 %v3583_v51, %s3327_s7 }
  0x63   : > { %3053 = vrot.lane.b32.xlu1 %v3602_v56, %s3328_s8  ;;  %3048 = vrot.lane.b32.xlu0 %v3605_v57, %s3328_s8 }
  0x67   : > { %3063 = vrot.lane.b32.xlu1 %v3602_v56, %s3327_s7  ;;  %3058 = vrot.lane.b32.xlu0 %v3605_v57, %s3327_s7 }
  0x6b   : > { %3073 = vrot.lane.b32.xlu1 %v3631_v0, %s3328_s8  ;;  %3068 = vrot.lane.b32.xlu0 %v3634_v1, %s3328_s8  ;;  %s4103_s8 = scalar_lea.sflag [#allocation4], %s333_s14 }
  0x6f   : > { %3083 = vrot.lane.b32.xlu1 %v3631_v0, %s3327_s7  ;;  %3078 = vrot.lane.b32.xlu0 %v3634_v1, %s3327_s7  ;;  %s4097_s7 = scalar_lea.hbm %s4229_s3, %s2185_s15 }
  0x73   : > { %3093 = vrot.lane.b32.xlu1 %v3480_v21, %s3329_s13  ;;  %3088 = vrot.lane.b32.xlu0 %v3473_v20, %s3329_s13 }
  0x77   : > { %3103 = vrot.lane.b32.xlu1 %v3495_v26, %s3329_s13  ;;  %3098 = vrot.lane.b32.xlu0 %v3498_v27, %s3329_s13 }
  0x7b   : > { %3113 = vrot.lane.b32.xlu1 %v3513_v32, %s3329_s13  ;;  %3108 = vrot.lane.b32.xlu0 %v3516_v33, %s3329_s13 }
  0x7f   : > { %3123 = vrot.lane.b32.xlu1 %v3529_v38, %s3329_s13  ;;  %3118 = vrot.lane.b32.xlu0 %v3531_v39, %s3329_s13 }
  0x83   : > { %3133 = vrot.lane.b32.xlu1 %v3558_v44, %s3329_s13  ;;  %3128 = vrot.lane.b32.xlu0 %v3561_v45, %s3329_s13 }
  0x87   : > { %3143 = vrot.lane.b32.xlu1 %v3580_v50, %s3329_s13  ;;  %3138 = vrot.lane.b32.xlu0 %v3583_v51, %s3329_s13 }
  0x8b   : > { %3153 = vrot.lane.b32.xlu1 %v3602_v56, %s3329_s13  ;;  %3148 = vrot.lane.b32.xlu0 %v3605_v57, %s3329_s13 }
  0x8f   : > { %3163 = vrot.lane.b32.xlu1 %v3631_v0, %s3329_s13  ;;  %3158 = vrot.lane.b32.xlu0 %v3634_v1, %s3329_s13 }
  0x93   : > { %3173 = vrot.lane.b32.xlu1 %v3480_v21, %s3330_s16  ;;  %3168 = vrot.lane.b32.xlu0 %v3473_v20, %s3330_s16 }
  0x97   : > { %3183 = vrot.lane.b32.xlu1 %v3495_v26, %s3330_s16  ;;  %3178 = vrot.lane.b32.xlu0 %v3498_v27, %s3330_s16 }
  0x9b   : > { %3193 = vrot.lane.b32.xlu1 %v3513_v32, %s3330_s16  ;;  %3188 = vrot.lane.b32.xlu0 %v3516_v33, %s3330_s16 }
  0x9f   : > { %3203 = vrot.lane.b32.xlu1 %v3529_v38, %s3330_s16  ;;  %3198 = vrot.lane.b32.xlu0 %v3531_v39, %s3330_s16 }
  0xa3   : > { %3213 = vrot.lane.b32.xlu1 %v3558_v44, %s3330_s16  ;;  %3208 = vrot.lane.b32.xlu0 %v3561_v45, %s3330_s16 }
  0xa5   : > { %v2939_v6 = vpop.permute.xlu1 %2938  ;;  %v2929_v7 = vpop.permute.xlu0 %2928 }
  0xa6   : > { %v2941_v8 = vunpack.i.h.bf16 %v2939_v6  ;;  %v2940_v9 = vunpack.i.l.bf16 %v2939_v6  ;;  %v2931_v10 = vunpack.i.h.bf16 %v2929_v7  ;;  %v2930_v11 = vunpack.i.l.bf16 %v2929_v7 }
  0xa7   : > { %3223 = vrot.lane.b32.xlu1 %v3580_v50, %s3330_s16  ;;  %3218 = vrot.lane.b32.xlu0 %v3583_v51, %s3330_s16 }
  0xa8   : > { %v980_v18 = vsel %vm979_vm0, %v2940_v9, %v2941_v8  ;;  %v576_v20 = vsel %vm575_vm1, %v2930_v11, %v2931_v10 }
  0xa9   : > { %v2944_v12 = vpop.permute.xlu1 %2943  ;;  %v2934_v13 = vpop.permute.xlu0 %2933 }
  0xaa   : > { %v2946_v14 = vunpack.i.h.bf16 %v2944_v12  ;;  %v2945_v15 = vunpack.i.l.bf16 %v2944_v12  ;;  %v2936_v16 = vunpack.i.h.bf16 %v2934_v13  ;;  %v2935_v17 = vunpack.i.l.bf16 %v2934_v13 }
  0xab   : > { %3233 = vrot.lane.b32.xlu1 %v3602_v56, %s3330_s16  ;;  %3228 = vrot.lane.b32.xlu0 %v3605_v57, %s3330_s16 }
  0xac   : > { %v981_v19 = vsel %vm979_vm0, %v2945_v15, %v2946_v14  ;;  %v577_v21 = vsel %vm575_vm1, %v2935_v17, %v2936_v16 }
  0xad   : > { %v2954_v22 = vpop.permute.xlu1 %2953  ;;  %v2949_v23 = vpop.permute.xlu0 %2948  ;;  %v2690_v24 = vpack.c.bf16 %v981_v19, %v980_v18  ;;  %v2626_v25 = vpack.c.bf16 %v577_v21, %v576_v20 }
  0xae   : > { %v2956_v26 = vunpack.i.h.bf16 %v2954_v22  ;;  %v2955_v27 = vunpack.i.l.bf16 %v2954_v22  ;;  %v2951_v28 = vunpack.i.h.bf16 %v2949_v23  ;;  %v2950_v29 = vunpack.i.l.bf16 %v2949_v23 }
  0xaf   : > { %3243 = vrot.lane.b32.xlu1 %v3631_v0, %s3330_s16  ;;  %2691 = vmatprep.subr.bf16.mxu0 %v2690_v24 }
  0xb0   : > { %3238 = vrot.lane.b32.xlu0 %v3634_v1, %s3330_s16  ;;  %2627 = vmatprep.subr.bf16.mxu1 %v2626_v25  ;;  %v578_v30 = vsel %vm575_vm1, %v2950_v29, %v2951_v28  ;;  %v579_v31 = vsel %vm575_vm1, %v2955_v27, %v2956_v26 }
  0xb1   : > { %2629 = vmatpush3.bf16.msra.mxu1 %v2626_v25  ;;  %2693 = vmatpush3.bf16.msra.mxu0 %v2690_v24  ;;  %v2964_v32 = vpop.permute.xlu1 %2963  ;;  %v2959_v33 = vpop.permute.xlu0 %2958  ;;  %v2630_v34 = vpack.c.bf16 %v579_v31, %v578_v30 }
  0xb2   : > { %v2966_v35 = vunpack.i.h.bf16 %v2964_v32  ;;  %v2965_v36 = vunpack.i.l.bf16 %v2964_v32  ;;  %v2961_v37 = vunpack.i.h.bf16 %v2959_v33  ;;  %v2960_v38 = vunpack.i.l.bf16 %v2959_v33 }
  0xb3   : > { %2631 = vmatprep.subr.bf16.mxu1 %v2630_v34 }
  0xb4   : > { %v982_v39 = vsel %vm979_vm0, %v2960_v38, %v2961_v37  ;;  %v983_v41 = vsel %vm979_vm0, %v2965_v36, %v2966_v35 }
  0xb5   : > { %2633 = vmatpush3.bf16.msra.mxu1 %v2630_v34  ;;  %v2974_v43 = vpop.permute.xlu1 %2973  ;;  %v2969_v44 = vpop.permute.xlu0 %2968  ;;  %v2694_v45 = vpack.c.bf16 %v983_v41, %v982_v39 }
  0xb6   : > { %v2976_v47 = vunpack.i.h.bf16 %v2974_v43  ;;  %v2975_v49 = vunpack.i.l.bf16 %v2974_v43  ;;  %v2971_v50 = vunpack.i.h.bf16 %v2969_v44  ;;  %v2970_v51 = vunpack.i.l.bf16 %v2969_v44 }
  0xb7   : > { %2695 = vmatprep.subr.bf16.mxu0 %v2694_v45 }
  0xb8   : > { %2697 = vmatpush3.bf16.msra.mxu0 %v2694_v45  ;;  %v580_v53 = vsel %vm575_vm1, %v2970_v51, %v2971_v50  ;;  %v581_v55 = vsel %vm575_vm1, %v2975_v49, %v2976_v47 }
  0xb9   : > { %v2984_v56 = vpop.permute.xlu1 %2983  ;;  %v2979_v57 = vpop.permute.xlu0 %2978  ;;  %v2634_v59 = vpack.c.bf16 %v581_v55, %v580_v53 }
  0xba   : > { %v2986_v61 = vunpack.i.h.bf16 %v2984_v56  ;;  %v2985_v62 = vunpack.i.l.bf16 %v2984_v56  ;;  %v2981_v0 = vunpack.i.h.bf16 %v2979_v57  ;;  %v2980_v1 = vunpack.i.l.bf16 %v2979_v57 }
  0xbb   : > { %2635 = vmatprep.subr.bf16.mxu1 %v2634_v59 }
  0xbc   : > { %2637 = vmatpush3.bf16.msra.mxu1 %v2634_v59  ;;  %v984_v2 = vsel %vm979_vm0, %v2980_v1, %v2981_v0  ;;  %v985_v6 = vsel %vm979_vm0, %v2985_v62, %v2986_v61 }
  0xbd   : > { %v2994_v7 = vpop.permute.xlu1 %2993  ;;  %v2989_v8 = vpop.permute.xlu0 %2988  ;;  %v2698_v9 = vpack.c.bf16 %v985_v6, %v984_v2 }
  0xbe   : > { %v2996_v10 = vunpack.i.h.bf16 %v2994_v7  ;;  %v2995_v11 = vunpack.i.l.bf16 %v2994_v7  ;;  %v2991_v12 = vunpack.i.h.bf16 %v2989_v8  ;;  %v2990_v13 = vunpack.i.l.bf16 %v2989_v8 }
  0xbf   : > { %2699 = vmatprep.subr.bf16.mxu0 %v2698_v9 }
  0xc0   : > { %2701 = vmatpush3.bf16.msra.mxu0 %v2698_v9  ;;  %v582_v14 = vsel %vm575_vm1, %v2990_v13, %v2991_v12  ;;  %v583_v15 = vsel %vm575_vm1, %v2995_v11, %v2996_v10 }
  0xc1   : > { %v3004_v16 = vpop.permute.xlu1 %3003  ;;  %v2999_v17 = vpop.permute.xlu0 %2998  ;;  %v2638_v18 = vpack.c.bf16 %v583_v15, %v582_v14 }
  0xc2   : > { %v3006_v19 = vunpack.i.h.bf16 %v3004_v16  ;;  %v3005_v20 = vunpack.i.l.bf16 %v3004_v16  ;;  %v3001_v21 = vunpack.i.h.bf16 %v2999_v17  ;;  %v3000_v22 = vunpack.i.l.bf16 %v2999_v17 }
  0xc3   : > { %2639 = vmatprep.subr.bf16.mxu1 %v2638_v18 }
  0xc4   : > { %2641 = vmatpush3.bf16.msra.mxu1 %v2638_v18  ;;  %v986_v23 = vsel %vm979_vm0, %v3000_v22, %v3001_v21  ;;  %v987_v24 = vsel %vm979_vm0, %v3005_v20, %v3006_v19 }
  0xc5   : > { %v3014_v25 = vpop.permute.xlu1 %3013  ;;  %v3009_v26 = vpop.permute.xlu0 %3008  ;;  %v2702_v27 = vpack.c.bf16 %v987_v24, %v986_v23 }
  0xc6   : > { %v3016_v28 = vunpack.i.h.bf16 %v3014_v25  ;;  %v3015_v29 = vunpack.i.l.bf16 %v3014_v25  ;;  %v3011_v30 = vunpack.i.h.bf16 %v3009_v26  ;;  %v3010_v31 = vunpack.i.l.bf16 %v3009_v26 }
  0xc7   : > { %2703 = vmatprep.subr.bf16.mxu0 %v2702_v27 }
  0xc8   : > { %2705 = vmatpush3.bf16.msra.mxu0 %v2702_v27  ;;  %v584_v32 = vsel %vm575_vm1, %v3010_v31, %v3011_v30  ;;  %v585_v33 = vsel %vm575_vm1, %v3015_v29, %v3016_v28 }
  0xc9   : > { %v3024_v34 = vpop.permute.xlu1 %3023  ;;  %v3019_v35 = vpop.permute.xlu0 %3018  ;;  %v2642_v36 = vpack.c.bf16 %v585_v33, %v584_v32 }
  0xca   : > { %v3026_v37 = vunpack.i.h.bf16 %v3024_v34  ;;  %v3025_v38 = vunpack.i.l.bf16 %v3024_v34  ;;  %v3021_v39 = vunpack.i.h.bf16 %v3019_v35  ;;  %v3020_v41 = vunpack.i.l.bf16 %v3019_v35 }
  0xcb   : > { %2643 = vmatprep.subr.bf16.mxu1 %v2642_v36 }
  0xcc   : > { %2645 = vmatpush3.bf16.msra.mxu1 %v2642_v36  ;;  %v988_v43 = vsel %vm979_vm0, %v3020_v41, %v3021_v39  ;;  %v989_v44 = vsel %vm979_vm0, %v3025_v38, %v3026_v37 }
  0xcd   : > { %v3034_v45 = vpop.permute.xlu1 %3033  ;;  %v3029_v47 = vpop.permute.xlu0 %3028  ;;  %v2706_v49 = vpack.c.bf16 %v989_v44, %v988_v43 }
  0xce   : > { %v3036_v50 = vunpack.i.h.bf16 %v3034_v45  ;;  %v3035_v51 = vunpack.i.l.bf16 %v3034_v45  ;;  %v3031_v53 = vunpack.i.h.bf16 %v3029_v47  ;;  %v3030_v55 = vunpack.i.l.bf16 %v3029_v47  ;;  %v2113_v45 = vld [vmem:[%s4228_s2 + $0x88] sm:$0xff] }
  0xcf   : > { %2707 = vmatprep.subr.bf16.mxu0 %v2706_v49 }
  0xd0   : > { %2709 = vmatpush3.bf16.msra.mxu0 %v2706_v49  ;;  %v586_v56 = vsel %vm575_vm1, %v3030_v55, %v3031_v53  ;;  %v587_v57 = vsel %vm575_vm1, %v3035_v51, %v3036_v50 }
  0xd1   : > { %v3044_v59 = vpop.permute.xlu1 %3043  ;;  %v3039_v61 = vpop.permute.xlu0 %3038  ;;  %v2646_v62 = vpack.c.bf16 %v587_v57, %v586_v56 }
  0xd2   : > { %v3046_v0 = vunpack.i.h.bf16 %v3044_v59  ;;  %v3045_v1 = vunpack.i.l.bf16 %v3044_v59  ;;  %v3041_v2 = vunpack.i.h.bf16 %v3039_v61  ;;  %v3040_v6 = vunpack.i.l.bf16 %v3039_v61  ;;  %v2114_v61 = vld [vmem:[%s4228_s2 + $0x90] sm:$0xff] }
  0xd3   : > { %2647 = vmatprep.subr.bf16.mxu1 %v2646_v62 }
  0xd4   : > { %2649 = vmatpush3.bf16.msra.mxu1 %v2646_v62  ;;  %v990_v7 = vsel %vm979_vm0, %v3040_v6, %v3041_v2  ;;  %v991_v8 = vsel %vm979_vm0, %v3045_v1, %v3046_v0  ;;  %v2115_v62 = vld [vmem:[%s4228_s2 + $0x98] sm:$0xff]  ;;  %v2129_v0 = vld [vmem:[%s4228_s2 + $0x108] sm:$0xff] }
  0xd5   : > { %v3054_v9 = vpop.permute.xlu1 %3053  ;;  %v3049_v10 = vpop.permute.xlu0 %3048  ;;  %v2710_v11 = vpack.c.bf16 %v991_v8, %v990_v7 }
  0xd6   : > { %v3056_v12 = vunpack.i.h.bf16 %v3054_v9  ;;  %v3055_v13 = vunpack.i.l.bf16 %v3054_v9  ;;  %v3051_v14 = vunpack.i.h.bf16 %v3049_v10  ;;  %v3050_v15 = vunpack.i.l.bf16 %v3049_v10 }
  0xd7   : > { %2711 = vmatprep.subr.bf16.mxu0 %v2710_v11 }
  0xd8   : > { %2713 = vmatpush3.bf16.msra.mxu0 %v2710_v11  ;;  %v588_v16 = vsel %vm575_vm1, %v3050_v15, %v3051_v14  ;;  %v589_v17 = vsel %vm575_vm1, %v3055_v13, %v3056_v12  ;;  %v2116_v12 = vld [vmem:[%s4228_s2 + $0xa0] sm:$0xff]  ;;  %v2130_v13 = vld [vmem:[%s4228_s2 + $0x110] sm:$0xff]  ;;  %v2117_v14 = vld [vmem:[%s4228_s2 + $0xa8] sm:$0xff] }
  0xd9   : > { %v3064_v18 = vpop.permute.xlu1 %3063  ;;  %v3059_v19 = vpop.permute.xlu0 %3058  ;;  %v2650_v20 = vpack.c.bf16 %v589_v17, %v588_v16  ;;  %v2131_v15 = vld [vmem:[%s4228_s2 + $0x118] sm:$0xff] }
  0xda   : > { %v3066_v21 = vunpack.i.h.bf16 %v3064_v18  ;;  %v3065_v22 = vunpack.i.l.bf16 %v3064_v18  ;;  %v3061_v23 = vunpack.i.h.bf16 %v3059_v19  ;;  %v3060_v24 = vunpack.i.l.bf16 %v3059_v19 }
  0xdb   : > { %2651 = vmatprep.subr.bf16.mxu1 %v2650_v20 }
  0xdc   : > { %2653 = vmatpush3.bf16.msra.mxu1 %v2650_v20  ;;  %v992_v25 = vsel %vm979_vm0, %v3060_v24, %v3061_v23  ;;  %v993_v26 = vsel %vm979_vm0, %v3065_v22, %v3066_v21  ;;  %v2118_v24 = vld [vmem:[%s4228_s2 + $0xb0] sm:$0xff] }
  0xdd   : > { %v3074_v27 = vpop.permute.xlu1 %3073  ;;  %v3069_v28 = vpop.permute.xlu0 %3068  ;;  %v2714_v29 = vpack.c.bf16 %v993_v26, %v992_v25  ;;  %v2132_v25 = vld [vmem:[%s4228_s2 + $0x120] sm:$0xff]  ;;  %v2119_v26 = vld [vmem:[%s4228_s2 + $0xb8] sm:$0xff] }
  0xde   : > { %v3076_v30 = vunpack.i.h.bf16 %v3074_v27  ;;  %v3075_v31 = vunpack.i.l.bf16 %v3074_v27  ;;  %v3071_v32 = vunpack.i.h.bf16 %v3069_v28  ;;  %v3070_v33 = vunpack.i.l.bf16 %v3069_v28  ;;  %v2133_v27 = vld [vmem:[%s4228_s2 + $0x128] sm:$0xff] }
  0xdf   : > { %2715 = vmatprep.subr.bf16.mxu0 %v2714_v29 }
  0xe0   : > { %2717 = vmatpush3.bf16.msra.mxu0 %v2714_v29  ;;  %v590_v34 = vsel %vm575_vm1, %v3070_v33, %v3071_v32  ;;  %v591_v35 = vsel %vm575_vm1, %v3075_v31, %v3076_v30 }
  0xe1   : > { %v3084_v36 = vpop.permute.xlu1 %3083  ;;  %v3079_v37 = vpop.permute.xlu0 %3078  ;;  %v2654_v38 = vpack.c.bf16 %v591_v35, %v590_v34 }
  0xe2   : > { %v3086_v39 = vunpack.i.h.bf16 %v3084_v36  ;;  %v3085_v41 = vunpack.i.l.bf16 %v3084_v36  ;;  %v3081_v43 = vunpack.i.h.bf16 %v3079_v37  ;;  %v3080_v44 = vunpack.i.l.bf16 %v3079_v37  ;;  %v2120_v37 = vld [vmem:[%s4228_s2 + $0xc0] sm:$0xff] }
  0xe3   : > { %2655 = vmatprep.subr.bf16.mxu1 %v2654_v38 }
  0xe4   : > { %2657 = vmatpush3.bf16.msra.mxu1 %v2654_v38  ;;  %v994_v47 = vsel %vm979_vm0, %v3080_v44, %v3081_v43  ;;  %v995_v49 = vsel %vm979_vm0, %v3085_v41, %v3086_v39  ;;  %v2134_v38 = vld [vmem:[%s4228_s2 + $0x130] sm:$0xff] }
  0xe5   : > { %v3094_v50 = vpop.permute.xlu1 %3093  ;;  %v3089_v51 = vpop.permute.xlu0 %3088  ;;  %2659 = vmatprep.subr.bf16.mxu1 %v3624_v63  ;;  %v2718_v53 = vpack.c.bf16 %v995_v49, %v994_v47 }
  0xe6   : > { %v3096_v55 = vunpack.i.h.bf16 %v3094_v50  ;;  %v3095_v56 = vunpack.i.l.bf16 %v3094_v50  ;;  %v3091_v57 = vunpack.i.h.bf16 %v3089_v51  ;;  %v3090_v59 = vunpack.i.l.bf16 %v3089_v51 }
  0xe7   : > { %2379 = vmatmul.mubr.f32.vlgmr.msra.gmra.mrb[0].mxu1 %v2113_v45  ;;  %2719 = vmatprep.subr.bf16.mxu0 %v2718_v53 }
  0xe8   : > { %2661 = vmatpush3.bf16.msra.mxu1 %v3624_v63  ;;  %2721 = vmatpush3.bf16.msra.mxu0 %v2718_v53  ;;  %v1255_v1 = vsel %vm1254_vm2, %v3090_v59, %v3091_v57  ;;  %v1256_v2 = vsel %vm1254_vm2, %v3095_v56, %v3096_v55  ;;  %v2122_v53 = vld [vmem:[%s4228_s2 + $0xd0] sm:$0xff]  ;;  %v2136_v55 = vld [vmem:[%s4228_s2 + $0x140] sm:$0xff] }
  0xe9   : > { %v3104_v6 = vpop.permute.xlu1 %3103  ;;  %v3099_v7 = vpop.permute.xlu0 %3098  ;;  %2381 = vmatprep.mubr.f32.mxu1 %v2114_v61  ;;  %2663 = vmatprep.subr.bf16.mxu1 %v3641_v3  ;;  %v2722_v8 = vpack.c.bf16 %v1256_v2, %v1255_v1 }
  0xea   : > { %v3106_v63 = vunpack.i.h.bf16 %v3104_v6  ;;  %v3105_v9 = vunpack.i.l.bf16 %v3104_v6  ;;  %v3101_v10 = vunpack.i.h.bf16 %v3099_v7  ;;  %v3100_v11 = vunpack.i.l.bf16 %v3099_v7 }
  0xeb   : > { %2382 = vmatmul.mubr.f32.gmra.mrb[2].mxu1 %v2115_v62  ;;  %2491 = vmatmul.mubr.f32.vlgmr.msra.gmra.mrb[0].mxu0 %v2129_v0  ;;  %v2682_v0 = vpack.c.bf16 %v3590_v52, %v3594_v54  ;;  %v2125_v52 = vld [vmem:[%s4228_s2 + $0xe8] sm:$0xff]  ;;  %v2139_v54 = vld [vmem:[%s4228_s2 + $0x158] sm:$0xff] }
  0xec   : > { %2723 = vmatprep.subr.bf16.mxu0 %v2722_v8  ;;  %2665 = vmatpush3.bf16.msra.mxu1 %v3641_v3  ;;  %v1257_v16 = vsel %vm1254_vm2, %v3100_v11, %v3101_v10  ;;  %v1258_v17 = vsel %vm1254_vm2, %v3105_v9, %v3106_v63  ;;  %v2138_v63 = vld [vmem:[%s4228_s2 + $0x150] sm:$0xff] }
  0xed   : > { %2725 = vmatpush3.bf16.msra.mxu0 %v2722_v8  ;;  %v3114_v18 = vpop.permute.xlu1 %3113  ;;  %v3109_v19 = vpop.permute.xlu0 %3108  ;;  %2384 = vmatprep.mubr.f32.mxu1 %v2116_v12  ;;  %v2726_v20 = vpack.c.bf16 %v1258_v17, %v1257_v16  ;;  %v2124_v8 = vld [vmem:[%s4228_s2 + $0xe0] sm:$0xff] }
  0xee   : > { %v3116_v21 = vunpack.i.h.bf16 %v3114_v18  ;;  %v3115_v22 = vunpack.i.l.bf16 %v3114_v18  ;;  %v3111_v3 = vunpack.i.h.bf16 %v3109_v19  ;;  %v3110_v23 = vunpack.i.l.bf16 %v3109_v19  ;;  %2493 = vmatprep.mubr.f32.mxu0 %v2130_v13  ;;  %2667 = vmatprep.subr.bf16.mxu1 %v3649_v4  ;;  %v2126_v19 = vld [vmem:[%s4228_s2 + $0xf0] sm:$0xff] }
  0xef   : > { %2385 = vmatmul.mubr.f32.gmra.mrb[4].mxu1 %v2117_v14  ;;  %2494 = vmatmul.mubr.f32.gmra.mrb[2].mxu0 %v2131_v15  ;;  %v2686_v14 = vpack.c.bf16 %v3612_v58, %v3616_v60  ;;  %v2127_v58 = vld [vmem:[%s4228_s2 + $0xf8] sm:$0xff]  ;;  %v2141_v60 = vld [vmem:[%s4228_s2 + $0x168] sm:$0xff] }
  0xf0   : > { %2727 = vmatprep.subr.bf16.mxu0 %v2726_v20  ;;  %2669 = vmatpush3.bf16.msra.mxu1 %v3649_v4  ;;  %v1259_v28 = vsel %vm1254_vm2, %v3110_v23, %v3111_v3  ;;  %v1260_v29 = vsel %vm1254_vm2, %v3115_v22, %v3116_v21  ;;  %v2674_v4 = vpack.c.bf16 %v3546_v40, %v3550_v42  ;;  %v2121_v40 = vld [vmem:[%s4228_s2 + $0xc8] sm:$0xff]  ;;  %v2135_v42 = vld [vmem:[%s4228_s2 + $0x138] sm:$0xff] }
  0xf1   : > { %2729 = vmatpush3.bf16.msra.mxu0 %v2726_v20  ;;  %v3124_v30 = vpop.permute.xlu1 %3123  ;;  %v3119_v31 = vpop.permute.xlu0 %3118  ;;  %2387 = vmatprep.mubr.f32.mxu1 %v2118_v24  ;;  %v2730_v32 = vpack.c.bf16 %v1260_v29, %v1259_v28  ;;  %v2140_v20 = vld [vmem:[%s4228_s2 + $0x160] sm:$0xff] }
  0xf2   : > { %v3126_v33 = vunpack.i.h.bf16 %v3124_v30  ;;  %v3125_v34 = vunpack.i.l.bf16 %v3124_v30  ;;  %v3121_v35 = vunpack.i.h.bf16 %v3119_v31  ;;  %v3120_v36 = vunpack.i.l.bf16 %v3119_v31  ;;  %2496 = vmatprep.mubr.f32.mxu0 %v2132_v25  ;;  %2671 = vmatprep.subr.bf16.mxu1 %v3656_v5  ;;  %v446_v29 = vld [vmem:[%s4228_s2] sm:$0xff]  ;;  %v2142_v30 = vld [vmem:[%s4228_s2 + $0x170] sm:$0xff]  ;;  %v447_v31 = vld [vmem:[%s4228_s2 + $0x8] sm:$0xff] }
  0xf3   : > { %2388 = vmatmul.mubr.f32.gmra.mrb[6].mxu1 %v2119_v26  ;;  %2497 = vmatmul.mubr.f32.gmra.mrb[4].mxu0 %v2133_v27 }
  0xf4   : > { %2731 = vmatprep.subr.bf16.mxu0 %v2730_v32  ;;  %2673 = vmatpush3.bf16.msra.mxu1 %v3656_v5  ;;  %v1261_v39 = vsel %vm1254_vm2, %v3120_v36, %v3121_v35  ;;  %v1262_v41 = vsel %vm1254_vm2, %v3125_v34, %v3126_v33  ;;  %v2678_v5 = vpack.c.bf16 %v3568_v46, %v3572_v48  ;;  %v2123_v46 = vld [vmem:[%s4228_s2 + $0xd8] sm:$0xff]  ;;  %v2137_v48 = vld [vmem:[%s4228_s2 + $0x148] sm:$0xff] }
  0xf5   : > { %2733 = vmatpush3.bf16.msra.mxu0 %v2730_v32  ;;  %v3134_v43 = vpop.permute.xlu1 %3133  ;;  %v3129_v44 = vpop.permute.xlu0 %3128  ;;  %2390 = vmatprep.mubr.f32.mxu1 %v2120_v37  ;;  %v2734_v45 = vpack.c.bf16 %v1262_v41, %v1261_v39  ;;  %v2143_v32 = vld [vmem:[%s4228_s2 + $0x178] sm:$0xff]  ;;  %v448_v37 = vld [vmem:[%s4228_s2 + $0x10] sm:$0xff]  ;;  %v2144_v41 = vld [vmem:[%s4228_s2 + $0x180] sm:$0xff] }
  0xf6   : > { %v3136_v47 = vunpack.i.h.bf16 %v3134_v43  ;;  %v3135_v49 = vunpack.i.l.bf16 %v3134_v43  ;;  %v3131_v50 = vunpack.i.h.bf16 %v3129_v44  ;;  %v3130_v51 = vunpack.i.l.bf16 %v3129_v44  ;;  %2499 = vmatprep.mubr.f32.mxu0 %v2134_v38  ;;  %2675 = vmatprep.subr.bf16.mxu1 %v2674_v4 }
  0xf7   : > { %2391 = vmatmul.mubr.f32.gmra.mrb[8].mxu1 %v2121_v40  ;;  %2500 = vmatmul.mubr.f32.gmra.mrb[6].mxu0 %v2135_v42 }
  0xf8   : > { %2735 = vmatprep.subr.bf16.mxu0 %v2734_v45  ;;  %2677 = vmatpush3.bf16.msra.mxu1 %v2674_v4  ;;  %v1263_v56 = vsel %vm1254_vm2, %v3130_v51, %v3131_v50  ;;  %v1264_v57 = vsel %vm1254_vm2, %v3135_v49, %v3136_v47  ;;  %v2145_v50 = vld [vmem:[%s4228_s2 + $0x188] sm:$0xff] }
  0xf9   : > { %2737 = vmatpush3.bf16.msra.mxu0 %v2734_v45  ;;  %v3144_v59 = vpop.permute.xlu1 %3143  ;;  %v3139_v61 = vpop.permute.xlu0 %3138  ;;  %2393 = vmatprep.mubr.f32.mxu1 %v2122_v53  ;;  %v2738_v62 = vpack.c.bf16 %v1264_v57, %v1263_v56  ;;  %v449_v45 = vld [vmem:[%s4228_s2 + $0x18] sm:$0xff]  ;;  %v2146_v56 = vld [vmem:[%s4228_s2 + $0x190] sm:$0xff] }
  0xfa   : > { %v3146_v1 = vunpack.i.h.bf16 %v3144_v59  ;;  %v3145_v2 = vunpack.i.l.bf16 %v3144_v59  ;;  %v3141_v6 = vunpack.i.h.bf16 %v3139_v61  ;;  %v3140_v7 = vunpack.i.l.bf16 %v3139_v61  ;;  %2502 = vmatprep.mubr.f32.mxu0 %v2136_v55  ;;  %2679 = vmatprep.subr.bf16.mxu1 %v2678_v5  ;;  %v451_v61 = vld [vmem:[%s4228_s2 + $0x28] sm:$0xff] }
  0xfb   : > { %2394 = vmatmul.mubr.f32.gmra.mrb[10].mxu1 %v2123_v46  ;;  %2503 = vmatmul.mubr.f32.gmra.mrb[8].mxu0 %v2137_v48  ;;  %v450_v48 = vld [vmem:[%s4228_s2 + $0x20] sm:$0xff] }
  0xfc   : > { %2739 = vmatprep.subr.bf16.mxu0 %v2738_v62  ;;  %2681 = vmatpush3.bf16.msra.mxu1 %v2678_v5  ;;  %v1265_v9 = vsel %vm1254_vm2, %v3140_v7, %v3141_v6  ;;  %v1266_v10 = vsel %vm1254_vm2, %v3145_v2, %v3146_v1  ;;  %v2147_v2 = vld [vmem:[%s4228_s2 + $0x198] sm:$0xff] }
  0xfd   : > { %2741 = vmatpush3.bf16.msra.mxu0 %v2738_v62  ;;  %v3154_v11 = vpop.permute.xlu1 %3153  ;;  %v3149_v12 = vpop.permute.xlu0 %3148  ;;  %2396 = vmatprep.mubr.f32.mxu1 %v2124_v8  ;;  %v2742_v13 = vpack.c.bf16 %v1266_v10, %v1265_v9 }
  0xfe   : > { %v3156_v15 = vunpack.i.h.bf16 %v3154_v11  ;;  %v3155_v16 = vunpack.i.l.bf16 %v3154_v11  ;;  %v3151_v17 = vunpack.i.h.bf16 %v3149_v12  ;;  %v3150_v18 = vunpack.i.l.bf16 %v3149_v12  ;;  %2505 = vmatprep.mubr.f32.mxu0 %v2138_v63  ;;  %2683 = vmatprep.subr.bf16.mxu1 %v2682_v0  ;;  %v453_v11 = vld [vmem:[%s4228_s2 + $0x38] sm:$0xff] }
  0xff   : > { %2397 = vmatmul.mubr.f32.gmra.mrb[12].mxu1 %v2125_v52  ;;  %2506 = vmatmul.mubr.f32.gmra.mrb[10].mxu0 %v2139_v54  ;;  %v452_v52 = vld [vmem:[%s4228_s2 + $0x30] sm:$0xff]  ;;  %v2148_v54 = vld [vmem:[%s4228_s2 + $0x1a0] sm:$0xff] }
 0x100   : > { %2743 = vmatprep.subr.bf16.mxu0 %v2742_v13  ;;  %2685 = vmatpush3.bf16.msra.mxu1 %v2682_v0  ;;  %v1267_v21 = vsel %vm1254_vm2, %v3150_v18, %v3151_v17  ;;  %v1268_v22 = vsel %vm1254_vm2, %v3155_v16, %v3156_v15  ;;  %v2149_v15 = vld [vmem:[%s4228_s2 + $0x1a8] sm:$0xff] }
 0x101   : > { %2745 = vmatpush3.bf16.msra.mxu0 %v2742_v13  ;;  %v3164_v3 = vpop.permute.xlu1 %3163  ;;  %v3159_v23 = vpop.permute.xlu0 %3158  ;;  %2399 = vmatprep.mubr.f32.mxu1 %v2126_v19  ;;  %v2746_v24 = vpack.c.bf16 %v1268_v22, %v1267_v21  ;;  %v455_v22 = vld [vmem:[%s4228_s2 + $0x48] sm:$0xff] }
 0x102   : > { %v3166_v25 = vunpack.i.h.bf16 %v3164_v3  ;;  %v3165_v26 = vunpack.i.l.bf16 %v3164_v3  ;;  %v3161_v27 = vunpack.i.h.bf16 %v3159_v23  ;;  %v3160_v28 = vunpack.i.l.bf16 %v3159_v23  ;;  %2508 = vmatprep.mubr.f32.mxu0 %v2140_v20  ;;  %2687 = vmatprep.subr.bf16.mxu1 %v2686_v14  ;;  %v454_v20 = vld [vmem:[%s4228_s2 + $0x40] sm:$0xff] }
 0x103   : > { %2400 = vmatmul.mubr.f32.gmra.mrb[14].mxu1 %v2127_v58  ;;  %2509 = vmatmul.mubr.f32.gmra.mrb[12].mxu0 %v2141_v60  ;;  %v2150_v58 = vld [vmem:[%s4228_s2 + $0x1b0] sm:$0xff] }
 0x104   : > { %2747 = vmatprep.subr.bf16.mxu0 %v2746_v24  ;;  %2689 = vmatpush3.bf16.msra.mxu1 %v2686_v14  ;;  %v1269_v4 = vsel %vm1254_vm2, %v3160_v28, %v3161_v27  ;;  %v1270_v33 = vsel %vm1254_vm2, %v3165_v26, %v3166_v25  ;;  %v2151_v25 = vld [vmem:[%s4228_s2 + $0x1b8] sm:$0xff] }
 0x105   : > { %2749 = vmatpush3.bf16.msra.mxu0 %v2746_v24  ;;  %v3174_v34 = vpop.permute.xlu1 %3173  ;;  %v3169_v35 = vpop.permute.xlu0 %3168  ;;  %2434 = vmatprep.mubr.f32.mxu1 %v446_v29  ;;  %v2750_v36 = vpack.c.bf16 %v1270_v33, %v1269_v4  ;;  %v457_v33 = vld [vmem:[%s4228_s2 + $0x58] sm:$0xff] }
 0x106   : > { %v3176_v38 = vunpack.i.h.bf16 %v3174_v34  ;;  %v3175_v40 = vunpack.i.l.bf16 %v3174_v34  ;;  %v3171_v42 = vunpack.i.h.bf16 %v3169_v35  ;;  %v3170_v39 = vunpack.i.l.bf16 %v3169_v35  ;;  %2511 = vmatprep.mubr.f32.mxu0 %v2142_v30  ;;  %v456_v30 = vld [vmem:[%s4228_s2 + $0x50] sm:$0xff] }
 0x107   : > { %2435 = vmatmul.mubr.f32.vlgmr.msra.gmra.mrb[0].mxu1 %v447_v31  ;;  %2512 = vmatmul.mubr.f32.gmra.mrb[14].mxu0 %v2143_v32  ;;  %v2152_v31 = vld [vmem:[%s4228_s2 + $0x1c0] sm:$0xff] }
 0x108   : > { %v1531_v43 = vsel %vm1529_vm3, %v3175_v40, %v3176_v38  ;;  %v1530_v44 = vsel %vm1529_vm3, %v3170_v39, %v3171_v42  ;;  %2751 = vmatprep.subr.bf16.mxu0 %v2750_v36  ;;  %2437 = vmatprep.mubr.f32.mxu1 %v448_v37  ;;  %v2153_v37 = vld [vmem:[%s4228_s2 + $0x1c8] sm:$0xff] }
 0x109   : > { %v2754_v5 = vpack.c.bf16 %v1531_v43, %v1530_v44  ;;  %2753 = vmatpush3.bf16.msra.mxu0 %v2750_v36  ;;  %v3184_v47 = vpop.permute.xlu1 %3183  ;;  %v3179_v49 = vpop.permute.xlu0 %3178  ;;  %2546 = vmatprep.mubr.f32.mxu0 %v2144_v41  ;;  %v458_v41 = vld [vmem:[%s4228_s2 + $0x60] sm:$0xff]  ;;  %v2154_v43 = vld [vmem:[%s4228_s2 + $0x1d0] sm:$0xff] }
 0x10a   : > { %v3186_v51 = vunpack.i.h.bf16 %v3184_v47  ;;  %v3185_v53 = vunpack.i.l.bf16 %v3184_v47  ;;  %v3181_v55 = vunpack.i.h.bf16 %v3179_v49  ;;  %v3180_v46 = vunpack.i.l.bf16 %v3179_v49 }
 0x10b   : > { %2438 = vmatmul.mubr.f32.gmra.mrb[2].mxu1 %v449_v45  ;;  %2755 = vmatprep.subr.bf16.mxu0 %v2754_v5 }
 0x10c   : > { %v1533_v57 = vsel %vm1529_vm3, %v3185_v53, %v3186_v51  ;;  %v1532_v59 = vsel %vm1529_vm3, %v3180_v46, %v3181_v55  ;;  %2547 = vmatmul.mubr.f32.vlgmr.msra.gmra.mrb[0].mxu0 %v2145_v50  ;;  %2786 = vmatprep.subr.bf16.mxu1 %v2754_v5  ;;  %v2155_v51 = vld [vmem:[%s4228_s2 + $0x1d8] sm:$0xff] }
 0x10d   : > { %v2758_v62 = vpack.c.bf16 %v1533_v57, %v1532_v59  ;;  %2757 = vmatpush3.bf16.msra.mxu0 %v2754_v5  ;;  %2794 = vmatpush3.bf16.msra.mxu1 %v2754_v5  ;;  %v3194_v0 = vpop.permute.xlu1 %3193  ;;  %v3189_v1 = vpop.permute.xlu0 %3188  ;;  %v459_v5 = vld [vmem:[%s4228_s2 + $0x68] sm:$0xff]  ;;  %v2156_v57 = vld [vmem:[%s4228_s2 + $0x1e0] sm:$0xff] }
 0x10e   : > { %v3196_v6 = vunpack.i.h.bf16 %v3194_v0  ;;  %v3195_v7 = vunpack.i.l.bf16 %v3194_v0  ;;  %v3191_v8 = vunpack.i.h.bf16 %v3189_v1  ;;  %v3190_v63 = vunpack.i.l.bf16 %v3189_v1  ;;  %2440 = vmatprep.mubr.f32.mxu1 %v450_v48  ;;  %2549 = vmatprep.mubr.f32.mxu0 %v2146_v56  ;;  %v460_v56 = vld [vmem:[%s4228_s2 + $0x70] sm:$0xff] }
 0x10f   : > { %2441 = vmatmul.mubr.f32.gmra.mrb[4].mxu1 %v451_v61  ;;  %2759 = vmatprep.subr.bf16.mxu0 %v2758_v62 }
 0x110   : > { %v1535_v9 = vsel %vm1529_vm3, %v3195_v7, %v3196_v6  ;;  %v1534_v10 = vsel %vm1529_vm3, %v3190_v63, %v3191_v8  ;;  %2550 = vmatmul.mubr.f32.gmra.mrb[2].mxu0 %v2147_v2  ;;  %2787 = vmatprep.subr.bf16.mxu1 %v2758_v62  ;;  %v2157_v2 = vld [vmem:[%s4228_s2 + $0x1e8] sm:$0xff] }
 0x111   : > { %v2762_v12 = vpack.c.bf16 %v1535_v9, %v1534_v10  ;;  %2761 = vmatpush3.bf16.msra.mxu0 %v2758_v62  ;;  %2795 = vmatpush3.bf16.msra.mxu1 %v2758_v62  ;;  %v3204_v13 = vpop.permute.xlu1 %3203  ;;  %v3199_v14 = vpop.permute.xlu0 %3198  ;;  %v461_v62 = vld [vmem:[%s4228_s2 + $0x78] sm:$0xff]  ;;  %v2168_v9 = vld [vmem:[%s4228_s2 + $0x240] sm:$0xff] }
 0x112   : > { %v3206_v16 = vunpack.i.h.bf16 %v3204_v13  ;;  %v3205_v17 = vunpack.i.l.bf16 %v3204_v13  ;;  %v3201_v18 = vunpack.i.h.bf16 %v3199_v14  ;;  %v3200_v19 = vunpack.i.l.bf16 %v3199_v14  ;;  %2443 = vmatprep.mubr.f32.mxu1 %v452_v52  ;;  %2552 = vmatprep.mubr.f32.mxu0 %v2148_v54  ;;  %v2158_v54 = vld [vmem:[%s4228_s2 + $0x1f0] sm:$0xff]  ;;  %v2160_v14 = vld [vmem:[%s4228_s2 + $0x200] sm:$0xff] }
 0x113   : > { %2444 = vmatmul.mubr.f32.gmra.mrb[6].mxu1 %v453_v11  ;;  %2763 = vmatprep.subr.bf16.mxu0 %v2762_v12 }
 0x114   : > { %v1537_v60 = vsel %vm1529_vm3, %v3205_v17, %v3206_v16  ;;  %v1536_v21 = vsel %vm1529_vm3, %v3200_v19, %v3201_v18  ;;  %2553 = vmatmul.mubr.f32.gmra.mrb[4].mxu0 %v2149_v15  ;;  %2788 = vmatprep.subr.bf16.mxu1 %v2762_v12  ;;  %v2161_v15 = vld [vmem:[%s4228_s2 + $0x208] sm:$0xff]  ;;  %v2162_v17 = vld [vmem:[%s4228_s2 + $0x210] sm:$0xff]  ;;  %v2163_v19 = vld [vmem:[%s4228_s2 + $0x218] sm:$0xff] }
 0x115   : > { %v2766_v3 = vpack.c.bf16 %v1537_v60, %v1536_v21  ;;  %2765 = vmatpush3.bf16.msra.mxu0 %v2762_v12  ;;  %2796 = vmatpush3.bf16.msra.mxu1 %v2762_v12  ;;  %v3214_v23 = vpop.permute.xlu1 %3213  ;;  %v3209_v24 = vpop.permute.xlu0 %3208  ;;  %v2159_v12 = vld [vmem:[%s4228_s2 + $0x1f8] sm:$0xff]  ;;  %v2169_v16 = vld [vmem:[%s4228_s2 + $0x248] sm:$0xff]  ;;  %v2170_v18 = vld [vmem:[%s4228_s2 + $0x250] sm:$0xff] }
 0x116   : > { %v3216_v26 = vunpack.i.h.bf16 %v3214_v23  ;;  %v3215_v27 = vunpack.i.l.bf16 %v3214_v23  ;;  %v3211_v28 = vunpack.i.h.bf16 %v3209_v24  ;;  %v3210_v29 = vunpack.i.l.bf16 %v3209_v24  ;;  %2446 = vmatprep.mubr.f32.mxu1 %v454_v20  ;;  %2555 = vmatprep.mubr.f32.mxu0 %v2150_v58  ;;  %v2171_v20 = vld [vmem:[%s4228_s2 + $0x258] sm:$0xff]  ;;  %v2164_v58 = vld [vmem:[%s4228_s2 + $0x220] sm:$0xff]  ;;  %v2165_v21 = vld [vmem:[%s4228_s2 + $0x228] sm:$0xff] }
 0x117   : > { %2447 = vmatmul.mubr.f32.gmra.mrb[8].mxu1 %v455_v22  ;;  %2767 = vmatprep.subr.bf16.mxu0 %v2766_v3  ;;  %v2172_v60 = vld [vmem:[%s4228_s2 + $0x260] sm:$0xff]  ;;  %v2173_v22 = vld [vmem:[%s4228_s2 + $0x268] sm:$0xff]  ;;  %v2174_v23 = vld [vmem:[%s4228_s2 + $0x270] sm:$0xff] }
 0x118   : > { %v1539_v32 = vsel %vm1529_vm3, %v3215_v27, %v3216_v26  ;;  %v1538_v4 = vsel %vm1529_vm3, %v3210_v29, %v3211_v28  ;;  %2556 = vmatmul.mubr.f32.gmra.mrb[6].mxu0 %v2151_v25  ;;  %2789 = vmatprep.subr.bf16.mxu1 %v2766_v3  ;;  %v2167_v24 = vld [vmem:[%s4228_s2 + $0x238] sm:$0xff] }
 0x119   : > { %v2770_v34 = vpack.c.bf16 %v1539_v32, %v1538_v4  ;;  %2769 = vmatpush3.bf16.msra.mxu0 %v2766_v3  ;;  %2797 = vmatpush3.bf16.msra.mxu1 %v2766_v3  ;;  %v3224_v35 = vpop.permute.xlu1 %3223  ;;  %v3219_v36 = vpop.permute.xlu0 %3218  ;;  %v2166_v3 = vld [vmem:[%s4228_s2 + $0x230] sm:$0xff]  ;;  %v2175_v25 = vld [vmem:[%s4228_s2 + $0x278] sm:$0xff] }
 0x11a   : > { %v3226_v38 = vunpack.i.h.bf16 %v3224_v35  ;;  %v3225_v40 = vunpack.i.l.bf16 %v3224_v35  ;;  %v3221_v42 = vunpack.i.h.bf16 %v3219_v36  ;;  %v3220_v39 = vunpack.i.l.bf16 %v3219_v36  ;;  %2449 = vmatprep.mubr.f32.mxu1 %v456_v30  ;;  %2558 = vmatprep.mubr.f32.mxu0 %v2152_v31 }
 0x11b   : > { %2450 = vmatmul.mubr.f32.gmra.mrb[10].mxu1 %v457_v33  ;;  %2771 = vmatprep.subr.bf16.mxu0 %v2770_v34 }
 0x11c   : > { %v1541_v44 = vsel %vm1529_vm3, %v3225_v40, %v3226_v38  ;;  %v1540_v45 = vsel %vm1529_vm3, %v3220_v39, %v3221_v42  ;;  %2559 = vmatmul.mubr.f32.gmra.mrb[8].mxu0 %v2153_v37  ;;  %2790 = vmatprep.subr.bf16.mxu1 %v2770_v34 }
 0x11d   : > { %v2774_v47 = vpack.c.bf16 %v1541_v44, %v1540_v45  ;;  %2773 = vmatpush3.bf16.msra.mxu0 %v2770_v34  ;;  %2798 = vmatpush3.bf16.msra.mxu1 %v2770_v34  ;;  %v3234_v49 = vpop.permute.xlu1 %3233  ;;  %v3229_v50 = vpop.permute.xlu0 %3228 }
 0x11e   : > { %v3236_v53 = vunpack.i.h.bf16 %v3234_v49  ;;  %v3235_v55 = vunpack.i.l.bf16 %v3234_v49  ;;  %v3231_v46 = vunpack.i.h.bf16 %v3229_v50  ;;  %v3230_v48 = vunpack.i.l.bf16 %v3229_v50  ;;  %2452 = vmatprep.mubr.f32.mxu1 %v458_v41  ;;  %2561 = vmatprep.mubr.f32.mxu0 %v2154_v43 }
 0x11f   : > { %2453 = vmatmul.mubr.f32.gmra.mrb[12].mxu1 %v459_v5  ;;  %2775 = vmatprep.subr.bf16.mxu0 %v2774_v47 }
 0x120   : > { %v1543_v59 = vsel %vm1529_vm3, %v3235_v55, %v3236_v53  ;;  %v1542_v61 = vsel %vm1529_vm3, %v3230_v48, %v3231_v46  ;;  %2562 = vmatmul.mubr.f32.gmra.mrb[10].mxu0 %v2155_v51  ;;  %2791 = vmatprep.subr.bf16.mxu1 %v2774_v47  ;;  %v1725_v51 = vlaneseq }
 0x121   : > { %v2778_v0 = vpack.c.bf16 %v1543_v59, %v1542_v61  ;;  %2777 = vmatpush3.bf16.msra.mxu0 %v2774_v47  ;;  %2799 = vmatpush3.bf16.msra.mxu1 %v2774_v47  ;;  %v3244_v1 = vpop.permute.xlu1 %3243 }
 0x122   : > { %v3246_v6 = vunpack.i.h.bf16 %v3244_v1  ;;  %v3245_v7 = vunpack.i.l.bf16 %v3244_v1  ;;  %v3239_v8 = vpop.permute.xlu0 %3238  ;;  %2455 = vmatprep.mubr.f32.mxu1 %v460_v56  ;;  %2564 = vmatprep.mubr.f32.mxu0 %v2156_v57  ;;  %v4028_v56 = vand.u32 127, %v1725_v51 }
 0x123   : > { %v3241_v63 = vunpack.i.h.bf16 %v3239_v8  ;;  %v3240_v52 = vunpack.i.l.bf16 %v3239_v8  ;;  %2456 = vmatmul.mubr.f32.gmra.mrb[14].mxu1 %v461_v62  ;;  %2779 = vmatprep.subr.bf16.mxu0 %v2778_v0 }
 0x124   : > { %v1545_v10 = vsel %vm1529_vm3, %v3245_v7, %v3246_v6  ;;  %2565 = vmatmul.mubr.f32.gmra.mrb[12].mxu0 %v2157_v2  ;;  %2792 = vmatprep.subr.bf16.mxu1 %v2778_v0  ;;  %vm1728_vm4 = vcmp.lt.s32.totalorder %v4028_v56, 16 }
 0x125   : > { %v1544_v11 = vsel %vm1529_vm3, %v3240_v52, %v3241_v63  ;;  %2781 = vmatpush3.bf16.msra.mxu0 %v2778_v0  ;;  %2800 = vmatpush3.bf16.msra.mxu1 %v2778_v0 }
 0x126   : > { %v2782_v13 = vpack.c.bf16 %v1545_v10, %v1544_v11  ;;  %2567 = vmatprep.mubr.f32.mxu0 %v2158_v54  ;;  %2614 = vmatprep.mubr.f32.mxu1 %v2168_v9 }
 0x128   : > { %2568 = vmatmul.mubr.f32.gmra.mrb[14].mxu0 %v2159_v12  ;;  %2783 = vmatprep.subr.bf16.mxu0 %v2782_v13 }
 0x129   : > { %2793 = vmatprep.subr.bf16.mxu1 %v2782_v13  ;;  %2785 = vmatpush3.bf16.msra.mxu0 %v2782_v13 }
 0x12a   : > { %2801 = vmatpush3.bf16.msra.mxu1 %v2782_v13  ;;  %2602 = vmatprep.mubr.f32.mxu0 %v2160_v14 }
 0x12c   : > { %2603 = vmatmul.mubr.f32.vlgmr.msra.gmra.mrb[0].mxu0 %v2161_v15 }
 0x12d   : > { %2615 = vmatmul.mubr.f32.vlgmr.msra.gmra.mrb[16].mxu1 %v2169_v16  ;;  %2605 = vmatprep.mubr.f32.mxu0 %v2162_v17 }
 0x12e   : > { %2617 = vmatprep.mubr.f32.mxu1 %v2170_v18 }
 0x130   : > { %2606 = vmatmul.mubr.f32.gmra.mrb[2].mxu0 %v2163_v19 }
 0x131   : > { %2618 = vmatmul.mubr.f32.gmra.mrb[18].mxu1 %v2171_v20  ;;  %2608 = vmatprep.mubr.f32.mxu0 %v2164_v58 }
 0x132   : > { %2620 = vmatprep.mubr.f32.mxu1 %v2172_v60 }
 0x134   : > { %2609 = vmatmul.mubr.f32.gmra.mrb[4].mxu0 %v2165_v21 }
 0x135   : > { %2621 = vmatmul.mubr.f32.gmra.mrb[20].mxu1 %v2173_v22  ;;  %2611 = vmatprep.mubr.f32.mxu0 %v2166_v3 }
 0x136   : > { %2623 = vmatprep.mubr.f32.mxu1 %v2174_v23 }
 0x138   : > { %2612 = vmatmul.mubr.f32.gmra.mrb[6].mxu0 %v2167_v24 }
 0x139   : > { %2624 = vmatmul.mubr.f32.gmra.mrb[22].mxu1 %v2175_v25 }
 0x1da   : > { %v2436_v26 = vpop.f32.mrb[0].mxu1 }
 0x1db   : > { %v819_v27 = vpop.f32.mrb[1].mxu1 }
 0x1de   : > { %v2439_v28 = vpop.f32.mrb[2].mxu1 }
 0x1df   : > { %v829_v29 = vpop.f32.mrb[3].mxu1 }
 0x1e2   : > { %v4020_v30 = vpop.f32.mrb[4].mxu1 }
 0x1e3   : > { %v4022_v31 = vpop.f32.mrb[5].mxu1 }
 0x1e6   : > { %v4024_v32 = vpop.f32.mrb[6].mxu1 }
 0x1e7   : > { %v4026_v4 = vpop.f32.mrb[7].mxu1 }
 0x1ea   : > { %v2448_v33 = vpop.f32.mrb[8].mxu1 }
 0x1eb   : > { %v859_v34 = vpop.f32.mrb[9].mxu1 }
 0x1ee   : > { %v2451_v35 = vpop.f32.mrb[10].mxu1 }
 0x1ef   : > { %v2560_v36 = vpop.f32.mrb[8].mxu0  ;;  %v869_v37 = vpop.f32.mrb[11].mxu1 }
 0x1f0   : > { %v2810_v38 = vadd.f32 %v2560_v36, %v2448_v33  ;;  %v1393_v40 = vpop.f32.mrb[9].mxu0 }
 0x1f1   : > { %v2812_v42 = vadd.f32 %v1393_v40, %v859_v34 }
 0x1f2   : > { %v2454_v39 = vpop.f32.mrb[12].mxu1 }
 0x1f3   : > { %v2563_v41 = vpop.f32.mrb[10].mxu0  ;;  %v879_v43 = vpop.f32.mrb[13].mxu1 }
 0x1f4   : > { %v2814_v44 = vadd.f32 %v2563_v41, %v2451_v35  ;;  %v1403_v45 = vpop.f32.mrb[11].mxu0 }
 0x1f5   : > { %v2816_v5 = vadd.f32 %v1403_v45, %v869_v37 }
 0x1f6   : > { %v2457_v47 = vpop.f32.mrb[14].mxu1 }
 0x1f7   : > { %v2566_v49 = vpop.f32.mrb[12].mxu0  ;;  %v889_v50 = vpop.f32.mrb[15].mxu1 }
 0x1f8   : > { %v2818_v53 = vadd.f32 %v2566_v49, %v2454_v39  ;;  %v1413_v55 = vpop.f32.mrb[13].mxu0 }
 0x1f9   : > { %v2820_v46 = vadd.f32 %v1413_v55, %v879_v43 }
 0x1fb   : > { %v2569_v48 = vpop.f32.mrb[14].mxu0 }
 0x1fc   : > { %v4030_v57 = vadd.f32 %v2569_v48, %v2457_v47  ;;  %v1423_v59 = vpop.f32.mrb[15].mxu0 }
 0x1fd   : > { %v4032_v61 = vadd.f32 %v1423_v59, %v889_v50 }
 0x1ff   : > { %v2604_v62 = vpop.f32.mrb[0].mxu0 }
 0x200   : > { %v2802_v0 = vadd.f32 %v2604_v62, %v2436_v26  ;;  %v2616_v1 = vpop.f32.mrb[16].mxu1  ;;  %v1628_v2 = vpop.f32.mrb[1].mxu0 }
 0x201   : > { %v2811_v6 = vadd.f32 %v2810_v38, %v2616_v1  ;;  %v2803_v7 = vadd.f32 %v1628_v2, %v819_v27  ;;  %v1668_v8 = vpop.f32.mrb[17].mxu1 }
 0x202   : > { %v2813_v63 = vadd.f32 %v2812_v42, %v1668_v8  ;;  %v1730_v52 = vsel %vm1728_vm4, %v2802_v0, 0.0 }
 0x203   : > { %v2607_v54 = vpop.f32.mrb[2].mxu0  ;;  %1763 = vadd.xlane.f32.xlu1 %v1730_v52  ;;  %1746 = vst [vmem:[%s4038_s24 + $0x8] sm:$0xff] %v1730_v52  ;;  %v1738_v9 = vsel %vm1728_vm4, %v2811_v6, 0.0  ;;  %v1729_v10 = vsel %vm1728_vm4, %v2803_v7, 0.0 }
 0x204   : > { %v2804_v11 = vadd.f32 %v2607_v54, %v2439_v28  ;;  %1779 = vadd.xlane.f32.xlu0 %v1738_v9  ;;  %1754 = vst [vmem:[%s4038_s24 + $0x48] sm:$0xff] %v1738_v9  ;;  %v2619_v12 = vpop.f32.mrb[18].mxu1  ;;  %v1638_v13 = vpop.f32.mrb[3].mxu0  ;;  %1745 = vst [vmem:[%s4038_s24] sm:$0xff] %v1729_v10  ;;  %v1737_v14 = vsel %vm1728_vm4, %v2813_v63, 0.0  ;;  %v1810_v27 = vmul.f32 %v1729_v10, %v1729_v10 }
 0x205   : > { %v2815_v15 = vadd.f32 %v2814_v44, %v2619_v12  ;;  %v2805_v16 = vadd.f32 %v1638_v13, %v829_v29  ;;  %v1678_v17 = vpop.f32.mrb[19].mxu1  ;;  %1753 = vst [vmem:[%s4038_s24 + $0x40] sm:$0xff] %v1737_v14  ;;  %v1811_v29 = vmul.f32 %v1730_v52, %v1730_v52  ;;  %v1818_v41 = vmul.f32 %v1737_v14, %v1737_v14 }
 0x206   : > { %v2817_v18 = vadd.f32 %v2816_v5, %v1678_v17  ;;  %v1732_v19 = vsel %vm1728_vm4, %v2804_v11, 0.0  ;;  %v1819_v43 = vmul.f32 %v1738_v9, %v1738_v9 }
 0x207   : > { %v1731_v20 = vsel %vm1728_vm4, %v2805_v16, 0.0  ;;  %v2610_v58 = vpop.f32.mrb[4].mxu0  ;;  %1777 = vadd.xlane.f32.xlu1 %v1737_v14  ;;  %1748 = vst [vmem:[%s4038_s24 + $0x18] sm:$0xff] %v1732_v19  ;;  %v1740_v60 = vsel %vm1728_vm4, %v2815_v15, 0.0  ;;  %v1813_v50 = vmul.f32 %v1732_v19, %v1732_v19 }
 0x208   : > { %1747 = vst [vmem:[%s4038_s24 + $0x10] sm:$0xff] %v1731_v20  ;;  %v2806_v21 = vadd.f32 %v2610_v58, %v4020_v30  ;;  %1761 = vadd.xlane.f32.xlu0 %v1729_v10  ;;  %v2622_v22 = vpop.f32.mrb[20].mxu1  ;;  %v1648_v3 = vpop.f32.mrb[5].mxu0  ;;  %v1739_v23 = vsel %vm1728_vm4, %v2817_v18, 0.0  ;;  %1756 = vst [vmem:[%s4038_s24 + $0x58] sm:$0xff] %v1740_v60  ;;  %v1812_v47 = vmul.f32 %v1731_v20, %v1731_v20 }
 0x209   : > { %v2819_v24 = vadd.f32 %v2818_v53, %v2622_v22  ;;  %v2807_v25 = vadd.f32 %v1648_v3, %v4022_v31  ;;  %v1688_v26 = vpop.f32.mrb[21].mxu1  ;;  %1755 = vst [vmem:[%s4038_s24 + $0x50] sm:$0xff] %v1739_v23  ;;  %v1820_v49 = vmul.f32 %v1739_v23, %v1739_v23  ;;  %v1821_v51 = vmul.f32 %v1740_v60, %v1740_v60 }
 0x20a   : > { %v2821_v28 = vadd.f32 %v2820_v46, %v1688_v26  ;;  %v1734_v30 = vsel %vm1728_vm4, %v2806_v21, 0.0 }
 0x20b   : > { %v2613_v33 = vpop.f32.mrb[6].mxu0  ;;  %1826 = vadd.xlane.f32.xlu1 %v1810_v27  ;;  %v1733_v34 = vsel %vm1728_vm4, %v2807_v25, 0.0  ;;  %1750 = vst [vmem:[%s4038_s24 + $0x28] sm:$0xff] %v1734_v30  ;;  %v1742_v31 = vsel %vm1728_vm4, %v2819_v24, 0.0  ;;  %v1815_v46 = vmul.f32 %v1734_v30, %v1734_v30 }
 0x20c   : > { %v2808_v35 = vadd.f32 %v2613_v33, %v4024_v32  ;;  %1828 = vadd.xlane.f32.xlu0 %v1811_v29  ;;  %v2625_v36 = vpop.f32.mrb[22].mxu1  ;;  %v1658_v37 = vpop.f32.mrb[7].mxu0  ;;  %1749 = vst [vmem:[%s4038_s24 + $0x20] sm:$0xff] %v1733_v34  ;;  %v1741_v38 = vsel %vm1728_vm4, %v2821_v28, 0.0  ;;  %1758 = vst [vmem:[%s4038_s24 + $0x68] sm:$0xff] %v1742_v31  ;;  %v1814_v53 = vmul.f32 %v1733_v34, %v1733_v34 }
 0x20d   : > { %v2823_v40 = vadd.f32 %v4030_v57, %v2625_v36  ;;  %v2809_v42 = vadd.f32 %v1658_v37, %v4026_v4  ;;  %v1698_v39 = vpop.f32.mrb[23].mxu1  ;;  %1757 = vst [vmem:[%s4038_s24 + $0x60] sm:$0xff] %v1741_v38  ;;  %v1822_v55 = vmul.f32 %v1741_v38, %v1741_v38  ;;  %v1823_v48 = vmul.f32 %v1742_v31, %v1742_v31 }
 0x20e   : > { %v2825_v32 = vadd.f32 %v4032_v61, %v1698_v39  ;;  %v1736_v44 = vsel %vm1728_vm4, %v2808_v35, 0.0 }
 0x20f   : > { %1842 = vadd.xlane.f32.xlu1 %v1818_v41  ;;  %v1735_v45 = vsel %vm1728_vm4, %v2809_v42, 0.0  ;;  %1752 = vst [vmem:[%s4038_s24 + $0x38] sm:$0xff] %v1736_v44  ;;  %v1744_v5 = vsel %vm1728_vm4, %v2823_v40, 0.0  ;;  %v1817_v59 = vmul.f32 %v1736_v44, %v1736_v44 }
 0x210   : > { %1844 = vadd.xlane.f32.xlu0 %v1819_v43  ;;  %1751 = vst [vmem:[%s4038_s24 + $0x30] sm:$0xff] %v1735_v45  ;;  %v1743_v4 = vsel %vm1728_vm4, %v2825_v32, 0.0  ;;  %1760 = vst [vmem:[%s4038_s24 + $0x78] sm:$0xff] %v1744_v5  ;;  %v1816_v56 = vmul.f32 %v1735_v45, %v1735_v45  ;;  %v1825_v61 = vmul.f32 %v1744_v5, %v1744_v5 }
 0x211   : > { %1759 = vst [vmem:[%s4038_s24 + $0x70] sm:$0xff] %v1743_v4  ;;  %v1824_v57 = vmul.f32 %v1743_v4, %v1743_v4 }
 0x213   : > { %1781 = vadd.xlane.f32.xlu1 %v1739_v23 }
 0x214   : > { %1767 = vadd.xlane.f32.xlu0 %v1732_v19 }
 0x217   : > { %1830 = vadd.xlane.f32.xlu1 %v1812_v47 }
 0x218   : > { %1783 = vadd.xlane.f32.xlu0 %v1740_v60 }
 0x21b   : > { %1846 = vadd.xlane.f32.xlu1 %v1820_v49 }
 0x21c   : > { %1765 = vadd.xlane.f32.xlu0 %v1731_v20 }
 0x21f   : > { %1769 = vadd.xlane.f32.xlu1 %v1733_v34 }
 0x220   : > { %1832 = vadd.xlane.f32.xlu0 %v1813_v50 }
 0x223   : > { %1785 = vadd.xlane.f32.xlu1 %v1741_v38 }
 0x224   : > { %1848 = vadd.xlane.f32.xlu0 %v1821_v51 }
 0x227   : > { %1834 = vadd.xlane.f32.xlu1 %v1814_v53 }
 0x228   : > { %1771 = vadd.xlane.f32.xlu0 %v1734_v30 }
 0x22b   : > { %1850 = vadd.xlane.f32.xlu1 %v1822_v55 }
 0x22c   : > { %1787 = vadd.xlane.f32.xlu0 %v1742_v31 }
 0x22f   : > { %1773 = vadd.xlane.f32.xlu1 %v1735_v45 }
 0x230   : > { %1836 = vadd.xlane.f32.xlu0 %v1815_v46 }
 0x233   : > { %1789 = vadd.xlane.f32.xlu1 %v1743_v4 }
 0x234   : > { %1852 = vadd.xlane.f32.xlu0 %v1823_v48 }
 0x237   : > { %1838 = vadd.xlane.f32.xlu1 %v1816_v56 }
 0x238   : > { %1775 = vadd.xlane.f32.xlu0 %v1736_v44 }
 0x23b   : > { %1854 = vadd.xlane.f32.xlu1 %v1824_v57 }
 0x23c   : > { %1791 = vadd.xlane.f32.xlu0 %v1744_v5 }
 0x240   : > { %1840 = vadd.xlane.f32.xlu0 %v1817_v59 }
 0x244   : > { %1856 = vadd.xlane.f32.xlu0 %v1825_v61 }
 0x245   : > { %3260 = shalt.err (!%p3257_p8)
}
 0x246   : > { %s3261_s14 = scalar_lea.hbm %s4097_s7, 2048  ;;  %s3265_s16 = scalar_lea.hbm %s4229_s3, 4096 }
 0x247   : > { %p3262_p11 = scmp.ne.s32.totalorder %s4097_s7, %s3261_s14  ;;  %p3266_p0 = scmp.lt.u32.totalorder %s4097_s7, %s4229_s3 }
 0x248   : > { %p3267_p1 = scmp.lt.u32.totalorder %s3265_s16, %s3261_s14  ;;  %p3269_p3 = scmp.lt.u32.totalorder %s3261_s14, %s4097_s7 }
 0x249   : > { %p3263_p12 = pnand %p3262_p11, %p3403_p5 }
 0x24a   : > { %p3268_p2 = por %p3267_p1, %p3266_p0 }
 0x24b   : > { %p3264_p13 = pneg %p3263_p12 }
 0x24c   : > { %p3270_p4 = por %p3269_p3, %p3268_p2 }
 0x24e   : > { %p3271_p6 = pnand %p3270_p4, %p3264_p13 }
 0x250   : > { %3274 = shalt.err (!%p3271_p6)
}
 0x251   : > { %s3332_s27 = smov 128   ;;  %s3333_s29 = smov 8   ;;  %vm1793_vm5 = vcmask 7168  }
 0x252   : > { %2866 = dma.vmem_to_hbm [thread:$0]  (%p3403_p5), %s4099_s25, 2048, %s4097_s7, %s4103_s8, %s3332_s27, %s3332_s27, %s3333_s29  }
 0x253   : > { %s4131_s10 = scalar_lea.vmem %s4230_s4, %s3453_s17  ;;  %s4145_s7 = scalar_lea.vmem %s4231_s5, %s3453_s17 }
 0x290   : > { %v1764_v62 = vpop.xlane.xlu1 %1763 }
 0x291   : > { %1795 = vst.msk [vmem:[%s4131_s10 + $0x8] sm:$0xff] %vm1793_vm5, %v1764_v62  ;;  %v1780_v0 = vpop.xlane.xlu0 %1779 }
 0x292   : > { %1803 = vst.msk [vmem:[%s4131_s10 + $0x48] sm:$0xff] %vm1793_vm5, %v1780_v0 }
 0x294   : > { %v1778_v1 = vpop.xlane.xlu1 %1777 }
 0x295   : > { %v1762_v2 = vpop.xlane.xlu0 %1761  ;;  %1802 = vst.msk [vmem:[%s4131_s10 + $0x40] sm:$0xff] %vm1793_vm5, %v1778_v1 }
 0x296   : > { %1794 = vst.msk [vmem:[%s4131_s10] sm:$0xff] %vm1793_vm5, %v1762_v2 }
 0x298   : > { %v1827_v6 = vpop.xlane.xlu1 %1826 }
 0x299   : > { %v1829_v7 = vpop.xlane.xlu0 %1828  ;;  %1858 = vst.msk [vmem:[%s4145_s7] sm:$0xff] %vm1793_vm5, %v1827_v6 }
 0x29a   : > { %1859 = vst.msk [vmem:[%s4145_s7 + $0x8] sm:$0xff] %vm1793_vm5, %v1829_v7 }
 0x29c   : > { %v1843_v8 = vpop.xlane.xlu1 %1842 }
 0x29d   : > { %v1845_v63 = vpop.xlane.xlu0 %1844  ;;  %1866 = vst.msk [vmem:[%s4145_s7 + $0x40] sm:$0xff] %vm1793_vm5, %v1843_v8 }
 0x29e   : > { %1867 = vst.msk [vmem:[%s4145_s7 + $0x48] sm:$0xff] %vm1793_vm5, %v1845_v63 }
 0x2a0   : > { %v1782_v52 = vpop.xlane.xlu1 %1781 }
 0x2a1   : > { %v1768_v54 = vpop.xlane.xlu0 %1767  ;;  %1804 = vst.msk [vmem:[%s4131_s10 + $0x50] sm:$0xff] %vm1793_vm5, %v1782_v52 }
 0x2a2   : > { %1797 = vst.msk [vmem:[%s4131_s10 + $0x18] sm:$0xff] %vm1793_vm5, %v1768_v54 }
 0x2a4   : > { %v1831_v9 = vpop.xlane.xlu1 %1830 }
 0x2a5   : > { %v1784_v10 = vpop.xlane.xlu0 %1783  ;;  %1860 = vst.msk [vmem:[%s4145_s7 + $0x10] sm:$0xff] %vm1793_vm5, %v1831_v9 }
 0x2a6   : > { %1805 = vst.msk [vmem:[%s4131_s10 + $0x58] sm:$0xff] %vm1793_vm5, %v1784_v10 }
 0x2a8   : > { %v1847_v11 = vpop.xlane.xlu1 %1846 }
 0x2a9   : > { %v1766_v12 = vpop.xlane.xlu0 %1765  ;;  %1868 = vst.msk [vmem:[%s4145_s7 + $0x50] sm:$0xff] %vm1793_vm5, %v1847_v11 }
 0x2aa   : > { %1796 = vst.msk [vmem:[%s4131_s10 + $0x10] sm:$0xff] %vm1793_vm5, %v1766_v12 }
 0x2ac   : > { %v1770_v13 = vpop.xlane.xlu1 %1769 }
 0x2ad   : > { %v1833_v14 = vpop.xlane.xlu0 %1832  ;;  %1798 = vst.msk [vmem:[%s4131_s10 + $0x20] sm:$0xff] %vm1793_vm5, %v1770_v13 }
 0x2ae   : > { %1861 = vst.msk [vmem:[%s4145_s7 + $0x18] sm:$0xff] %vm1793_vm5, %v1833_v14 }
 0x2b0   : > { %v1786_v15 = vpop.xlane.xlu1 %1785 }
 0x2b1   : > { %v1849_v16 = vpop.xlane.xlu0 %1848  ;;  %1806 = vst.msk [vmem:[%s4131_s10 + $0x60] sm:$0xff] %vm1793_vm5, %v1786_v15 }
 0x2b2   : > { %1869 = vst.msk [vmem:[%s4145_s7 + $0x58] sm:$0xff] %vm1793_vm5, %v1849_v16 }
 0x2b4   : > { %v1835_v17 = vpop.xlane.xlu1 %1834 }
 0x2b5   : > { %v1772_v18 = vpop.xlane.xlu0 %1771  ;;  %1862 = vst.msk [vmem:[%s4145_s7 + $0x20] sm:$0xff] %vm1793_vm5, %v1835_v17 }
 0x2b6   : > { %1799 = vst.msk [vmem:[%s4131_s10 + $0x28] sm:$0xff] %vm1793_vm5, %v1772_v18 }
 0x2b8   : > { %v1851_v19 = vpop.xlane.xlu1 %1850 }
 0x2b9   : > { %v1788_v20 = vpop.xlane.xlu0 %1787  ;;  %1870 = vst.msk [vmem:[%s4145_s7 + $0x60] sm:$0xff] %vm1793_vm5, %v1851_v19 }
 0x2ba   : > { %1807 = vst.msk [vmem:[%s4131_s10 + $0x68] sm:$0xff] %vm1793_vm5, %v1788_v20 }
 0x2bc   : > { %v1774_v58 = vpop.xlane.xlu1 %1773 }
 0x2bd   : > { %v1837_v60 = vpop.xlane.xlu0 %1836  ;;  %1800 = vst.msk [vmem:[%s4131_s10 + $0x30] sm:$0xff] %vm1793_vm5, %v1774_v58 }
 0x2be   : > { %1863 = vst.msk [vmem:[%s4145_s7 + $0x28] sm:$0xff] %vm1793_vm5, %v1837_v60 }
 0x2c0   : > { %v1790_v21 = vpop.xlane.xlu1 %1789 }
 0x2c1   : > { %v1853_v22 = vpop.xlane.xlu0 %1852  ;;  %1808 = vst.msk [vmem:[%s4131_s10 + $0x70] sm:$0xff] %vm1793_vm5, %v1790_v21 }
 0x2c2   : > { %1871 = vst.msk [vmem:[%s4145_s7 + $0x68] sm:$0xff] %vm1793_vm5, %v1853_v22 }
 0x2c4   : > { %v1839_v3 = vpop.xlane.xlu1 %1838 }
 0x2c5   : > { %v1776_v23 = vpop.xlane.xlu0 %1775  ;;  %1864 = vst.msk [vmem:[%s4145_s7 + $0x30] sm:$0xff] %vm1793_vm5, %v1839_v3 }
 0x2c6   : > { %1801 = vst.msk [vmem:[%s4131_s10 + $0x38] sm:$0xff] %vm1793_vm5, %v1776_v23 }
 0x2c8   : > { %v1855_v24 = vpop.xlane.xlu1 %1854 }
 0x2c9   : > { %v1792_v25 = vpop.xlane.xlu0 %1791  ;;  %1872 = vst.msk [vmem:[%s4145_s7 + $0x70] sm:$0xff] %vm1793_vm5, %v1855_v24 }
 0x2ca   : > { %1809 = vst.msk [vmem:[%s4131_s10 + $0x78] sm:$0xff] %vm1793_vm5, %v1792_v25 }
 0x2cd   : > { %v1841_v26 = vpop.xlane.xlu0 %1840 }
 0x2ce   : > { %1865 = vst.msk [vmem:[%s4145_s7 + $0x38] sm:$0xff] %vm1793_vm5, %v1841_v26 }
 0x2d1   : > { %v1857_v27 = vpop.xlane.xlu0 %1856 }
 0x2d2   : > { %1873 = vst.msk [vmem:[%s4145_s7 + $0x78] sm:$0xff] %vm1793_vm5, %v1857_v27 }
 0x2d3 PF: > { %s1928_s17 = sand.u32 1, %s3305_s18   ;;  %p2869_p5 = pnand %p2099_p10, %p3414_p9 }
 0x2d4   : > { %s1929_s8 = scalar_lea.sflag [#allocation4], %s1928_s17 }
 0x2d5   : > { %3300 = dma.done.wait (!%p2869_p5), %s1929_s8, 2048  }
 0x2d6   : > { %3302 = vsyncadd (!%p2869_p5), %s1929_s8, 4294965248  ;;  %s19_s23 = sadd.s32 1, %s3325_s23   ;;  %s4234_s18 = smov %s3309_s19 }
 0x2d7   : > { %p16_p7 = scmp.ge.s32.totalorder %s19_s23, 4   ;;  %s4235_s19 = smov %s3313_s20 }
 0x2d8   : > { %s4236_s20 = smov %s3412_s30  ;;  %s4237_s21 = smov %s3321_s22 }
 0x2d9   : > { %s4238_s22 = smov %s4240_s26  ;;  %18 = sbr.rel (!%p16_p7) target bundleno = 4 (0x4), region = 141 }
 0x2e0   :  { %1958 = vsyncpa [#allocation4], 1 }
 0x2e1   :  { %1960 = vsyncpa [#allocation4 + $0x1], 1 }

</bundles_post_ra>
